<compile_context>
chip_gen: v7x
topology: tpu7x:2x2x1
jax: 0.10.0
libtpu: 0.0.40
codegen_flags: <defaults>
</compile_context>

<pallas_src>
import jax
import jax.numpy as jnp
from jax import lax
from jax.experimental import pallas as pl
from jax.experimental.pallas import tpu as pltpu

# ----------------------------- configuration (small demo sizes) --------------
DIM = 16             # constructor arg `dim` (token embedding size)
NUM_HEAD = 8         # constructor arg `num_head` (8 keeps INNER lane-aligned)
DIM_HEAD = 16        # constructor arg `dim_head`
NUM_LAYERS = 2       # constructor arg `num_layers`
NUM_CAT = 4          # module-level num_cat
NUM_NUMERICAL = 3    # module-level num_numerical
HIDDEN_MULTS = (2, 4)
BATCH = 2
assert BATCH & (BATCH - 1) == 0  # power-of-two batch -> bitwise mask trick

INNER = NUM_HEAD * DIM_HEAD           # 128  (lane-aligned)
WIDE = 3 * INNER                      # 384  (fused qkv width)
FF_MULT = 4
FF_HID = FF_MULT * DIM                # 64
CAT_FLAT = NUM_CAT * DIM              # 64
INPUT_DIM = CAT_FLAT + NUM_NUMERICAL  # 67
H1 = HIDDEN_MULTS[0] * INPUT_DIM      # 134
H2 = HIDDEN_MULTS[1] * INPUT_DIM      # 268
H1P = 256                             # H1 padded to a multiple of 128
H2P = 384                             # H2 padded to a multiple of 128
TOKENS = BATCH * NUM_CAT              # 8   (token-major flattened rows)
EPS = 1e-5
SCALE = DIM_HEAD ** -0.5

# head-parameter slab row layout (rows 0-7: vectors; then aligned matrices)
W1_ROW = 8                            # w1 rows start (8-aligned)
W2_ROW = W1_ROW + 72                  # 80 (67 w1 rows padded to 72)
HEAD_ROWS = W2_ROW + H1P              # 336


def _ln(x, gamma, beta):
    """LayerNorm over the last axis (biased variance, eps=1e-5, like PyTorch)."""
    mean = jnp.mean(x, axis=-1, keepdims=True)
    var = jnp.mean((x - mean) ** 2, axis=-1, keepdims=True)
    return (x - mean) * lax.rsqrt(var + EPS) * gamma + beta


# ----------------------------- fused TabTransformer kernel -------------------
def tab_kernel(x_ref, xnum_ref,
               qkvw_ref, outw_ref, ff1w_ref, ff2w_ref, vec_ref, head_ref,
               o_ref):
    f32 = jnp.float32
    # x_ref: (TOKENS, DIM) token-major flattened categorical tokens
    # (row = t*BATCH + b).
    x = x_ref[...].astype(f32)

    # Block-diagonal batch mask built in-kernel (no DMA): same batch iff
    # row % BATCH == col % BATCH; BATCH is a power of two -> bitwise AND.
    row = lax.broadcasted_iota(jnp.int32, (TOKENS, TOKENS), 0)
    col = lax.broadcasted_iota(jnp.int32, (TOKENS, TOKENS), 1)
    mask = jnp.where((row & (BATCH - 1)) == (col & (BATCH - 1)),
                     0.0, -1e30).astype(f32)

    for l in range(NUM_LAYERS):
        vec = vec_ref[l]                              # (8, WIDE) per-layer vecs
        ln1_g = vec[0:1, :DIM]
        ln1_b = vec[1:2, :DIM]
        qkv_b = vec[2:3, :]                           # (1, WIDE)
        out_b = vec[3:4, :DIM]
        ln2_g = vec[4:5, :DIM]
        ln2_b = vec[5:6, :DIM]
        ff1_b = vec[6:7, :FF_HID]
        ff2_b = vec[7:8, :DIM]

        # ----- Residual(PreNorm(Attention)) -----
        hn = _ln(x, ln1_g, ln1_b)                     # (N, D)
        # ONE wide lane-dense projection; q/k/v are free 128-aligned slices.
        qkv = jnp.dot(hn, qkvw_ref[l], preferred_element_type=f32) + qkv_b
        q = qkv[:, 0:INNER] * SCALE                   # fold scale into q
        k = qkv[:, INNER:2 * INNER]
        v = qkv[:, 2 * INNER:3 * INNER]

        # Head-major views via static 16-lane slices (no 8x broadcast dup).
        qh = jnp.stack([q[:, h * DIM_HEAD:(h + 1) * DIM_HEAD]
                        for h in range(NUM_HEAD)], axis=0)   # (H, N, dh)
        kh = jnp.stack([k[:, h * DIM_HEAD:(h + 1) * DIM_HEAD]
                        for h in range(NUM_HEAD)], axis=0)
        vh = jnp.stack([v[:, h * DIM_HEAD:(h + 1) * DIM_HEAD]
                        for h in range(NUM_HEAD)], axis=0)

        sim = jnp.einsum('hne,hme->hnm', qh, kh,
                         preferred_element_type=f32) + mask   # (H, N, N)
        sim = sim - jnp.max(sim, axis=-1, keepdims=True)
        p = jnp.exp(sim)
        p = p * pl.reciprocal(jnp.sum(p, axis=-1, keepdims=True), approx=True)
        attn = jnp.einsum('hnm,hme->hne', p, vh,
                          preferred_element_type=f32)         # (H, N, dh)

        # Heads back lane-contiguous -> ONE out-projection matmul (K=128).
        attn_flat = jnp.concatenate([attn[h] for h in range(NUM_HEAD)],
                                    axis=-1)                  # (N, INNER)
        x = x + jnp.dot(attn_flat, outw_ref[l],
                        preferred_element_type=f32) + out_b

        # ----- Residual(PreNorm(FeedForward)) -----
        h2n = _ln(x, ln2_g, ln2_b)
        mid = jnp.maximum(
            jnp.dot(h2n, ff1w_ref[l], preferred_element_type=f32) + ff1_b, 0.0)
        x = x + jnp.dot(mid, ff2w_ref[l],
                        preferred_element_type=f32) + ff2_b

    # ----- head: LayerNorm(numerical) + "flatten + concat" + padded MLP -----
    num_g = head_ref[0:1, 0:NUM_NUMERICAL]
    num_b = head_ref[1:2, 0:NUM_NUMERICAL]
    b1 = head_ref[2:3, 0:H1P]                         # zero-padded past H1
    b2 = head_ref[3:4, 0:H2P]                         # zero-padded past H2
    b3 = head_ref[4:5, 0:1]
    w3_row = head_ref[5:6, 0:H2P]                     # w3 stored as a row
    w1 = head_ref[W1_ROW:W1_ROW + INPUT_DIM, 0:H1P]   # (67, 256), zero-padded
    w2 = head_ref[W2_ROW:W2_ROW + H1P, 0:H2P]         # (256, 384), zero-padded

    num_ln = _ln(xnum_ref[...].astype(f32), num_g, num_b)
    # Token-major: rows t*B..(t+1)*B are contiguous, so flatten(1) is a lane
    # concat -> ONE (B, 67) @ (67, 256) matmul instead of 4 tiny ones.
    mlp_in = jnp.concatenate(
        [x[t * BATCH:(t + 1) * BATCH, :] for t in range(NUM_CAT)] + [num_ln],
        axis=-1)                                       # (B, INPUT_DIM)
    h1 = jnp.maximum(jnp.dot(mlp_in, w1, preferred_element_type=f32) + b1, 0.0)
    h2 = jnp.maximum(jnp.dot(h1, w2, preferred_element_type=f32) + b2, 0.0)
    out = jnp.sum(h2 * w3_row, axis=-1, keepdims=True) + b3      # (B, 1)
    o_ref[...] = out.astype(o_ref.dtype)


# ----------------------------- wrapper ----------------------------------------
_VMEM = pl.BlockSpec(memory_space=pltpu.MemorySpace.VMEM)


def _pack_params(p):
    """Re-layout PyTorch-style parameters into a few contiguous kernel slabs."""
    L = NUM_LAYERS

    # (L, 8, 384): every per-layer vector parameter in one slab.
    vec = jnp.zeros((L, 8, WIDE), jnp.float32)
    vec = vec.at[:, 0, :DIM].set(p["ln1_g"])
    vec = vec.at[:, 1, :DIM].set(p["ln1_b"])
    vec = vec.at[:, 2, :].set(p["qkv_b"])
    vec = vec.at[:, 3, :DIM].set(p["out_b"])
    vec = vec.at[:, 4, :DIM].set(p["ln2_g"])
    vec = vec.at[:, 5, :DIM].set(p["ln2_b"])
    vec = vec.at[:, 6, :FF_HID].set(p["ff1_b"])
    vec = vec.at[:, 7, :DIM].set(p["ff2_b"])

    # (336, 384): every head-MLP parameter (zero-padded to lane-dense widths).
    head = jnp.zeros((HEAD_ROWS, H2P), jnp.float32)
    head = head.at[0, :NUM_NUMERICAL].set(p["num_g"])
    head = head.at[1, :NUM_NUMERICAL].set(p["num_b"])
    head = head.at[2, :H1].set(p["b1"])
    head = head.at[3, :H2].set(p["b2"])
    head = head.at[4, :1].set(p["b3"])
    head = head.at[5, :H2].set(p["w3"][:, 0])
    head = head.at[W1_ROW:W1_ROW + INPUT_DIM, :H1].set(p["w1"])
    head = head.at[W2_ROW:W2_ROW + H1, :H2].set(p["w2"])

    return dict(qkv_w=p["qkv_w"], out_w=p["out_w"],
                ff1_w=p["ff1_w"], ff2_w=p["ff2_w"],
                vec=vec, head=head)


@jax.jit
def tab_transformer_forward(x_cat, x_num, params):
    pp = _pack_params(params)
    # Glue only: token-major flatten of the categorical tokens.  All compute
    # (encoder layers + numerical LN + MLP head) runs in ONE kernel.
    x_tm = jnp.transpose(x_cat, (1, 0, 2)).reshape(TOKENS, DIM)

    args = (x_tm, x_num,
            pp["qkv_w"], pp["out_w"], pp["ff1_w"], pp["ff2_w"],
            pp["vec"], pp["head"])

    return pl.pallas_call(
        tab_kernel,
        out_shape=jax.ShapeDtypeStruct((BATCH, 1), jnp.float32),
        in_specs=[_VMEM] * len(args),
        out_specs=_VMEM,
    )(*args)


# ----------------------------- pure-JAX reference (for verification) ---------
def _ln_ref(x, gamma, beta):
    mean = jnp.mean(x, axis=-1, keepdims=True)
    var = jnp.mean((x - mean) ** 2, axis=-1, keepdims=True)
    return (x - mean) / jnp.sqrt(var + EPS) * gamma + beta


def reference_forward(x_cat, x_num, p):
    x = x_cat.astype(jnp.float32)
    for l in range(NUM_LAYERS):
        h = _ln_ref(x, p["ln1_g"][l], p["ln1_b"][l])
        qkv = h @ p["qkv_w"][l] + p["qkv_b"][l]
        q, k, v = jnp.split(qkv, 3, axis=-1)

        def heads(t):
            return t.reshape(BATCH, NUM_CAT, NUM_HEAD, DIM_HEAD).transpose(0, 2, 1, 3)
        q, k, v = map(heads, (q, k, v))
        sim = jnp.einsum("bhtd,bhsd->bhts", q, k) * SCALE
        sim = jax.nn.softmax(sim, axis=-1)
        attn = jnp.einsum("bhts,bhsd->bhtd", sim, v)
        attn = attn.transpose(0, 2, 1, 3).reshape(BATCH, NUM_CAT, INNER)
        x = x + attn @ p["out_w"][l] + p["out_b"][l]

        h2 = _ln_ref(x, p["ln2_g"][l], p["ln2_b"][l])
        ff = jnp.maximum(h2 @ p["ff1_w"][l] + p["ff1_b"][l], 0.0)
        x = x + ff @ p["ff2_w"][l] + p["ff2_b"][l]

    cat_flat = x.reshape(BATCH, -1)
    num_ln = _ln_ref(x_num.astype(jnp.float32), p["num_g"], p["num_b"])
    mlp_in = jnp.concatenate([cat_flat, num_ln], axis=-1)
    h1 = jnp.maximum(mlp_in @ p["w1"] + p["b1"], 0.0)
    h2m = jnp.maximum(h1 @ p["w2"] + p["b2"], 0.0)
    return h2m @ p["w3"] + p["b3"]


# ----------------------------- parameter init ---------------------------------
def init_params(key):
    ks = jax.random.split(key, 16)

    def nrm(k, shape, scale):
        return jax.random.normal(k, shape, jnp.float32) * scale

    return {
        "ln1_g": jnp.ones((NUM_LAYERS, DIM), jnp.float32),
        "ln1_b": jnp.zeros((NUM_LAYERS, DIM), jnp.float32),
        "qkv_w": nrm(ks[0], (NUM_LAYERS, DIM, WIDE), DIM ** -0.5),
        "qkv_b": nrm(ks[1], (NUM_LAYERS, WIDE), 0.02),
        "out_w": nrm(ks[2], (NUM_LAYERS, INNER, DIM), INNER ** -0.5),
        "out_b": nrm(ks[3], (NUM_LAYERS, DIM), 0.02),
        "ln2_g": jnp.ones((NUM_LAYERS, DIM), jnp.float32),
        "ln2_b": jnp.zeros((NUM_LAYERS, DIM), jnp.float32),
        "ff1_w": nrm(ks[4], (NUM_LAYERS, DIM, FF_HID), DIM ** -0.5),
        "ff1_b": nrm(ks[5], (NUM_LAYERS, FF_HID), 0.02),
        "ff2_w": nrm(ks[6], (NUM_LAYERS, FF_HID, DIM), FF_HID ** -0.5),
        "ff2_b": nrm(ks[7], (NUM_LAYERS, DIM), 0.02),
        "num_g": jnp.ones((NUM_NUMERICAL,), jnp.float32),
        "num_b": jnp.zeros((NUM_NUMERICAL,), jnp.float32),
        "w1": nrm(ks[8], (INPUT_DIM, H1), INPUT_DIM ** -0.5),
        "b1": nrm(ks[9], (H1,), 0.02),
        "w2": nrm(ks[10], (H1, H2), H1 ** -0.5),
        "b2": nrm(ks[11], (H2,), 0.02),
        "w3": nrm(ks[12], (H2, 1), H2 ** -0.5),
        "b3": nrm(ks[13], (1,), 0.02),
    }


# ----------------------------- main --------------------------------------------
if __name__ == "__main__":
    key = jax.random.PRNGKey(0)
    k_cat, k_num, k_par = jax.random.split(key, 3)

    x_cat = jax.random.normal(k_cat, (BATCH, NUM_CAT, DIM), jnp.float32)
    x_num = jax.random.normal(k_num, (BATCH, NUM_NUMERICAL), jnp.float32)
    params = init_params(k_par)

    out = tab_transformer_forward(x_cat, x_num, params)
    out = jax.block_until_ready(out)

    ref = reference_forward(x_cat, x_num, params)
    assert out.shape == (BATCH, 1), out.shape
    # Tolerance leaves headroom for the EUP approximate reciprocal used in the
    # softmax denominator.
    assert jnp.allclose(out, ref, atol=2e-3, rtol=2e-3), (out, ref)

    print("KERNEL_OK")
</pallas_src>

<mosaic_0001>
module attributes {stable_mosaic.version = 11 : i64} {
  func.func @tab_kernel(%arg0: memref<8x16xf32, #tpu.memory_space<vmem>>, %arg1: memref<2x3xf32, #tpu.memory_space<vmem>>, %arg2: memref<2x16x384xf32, #tpu.memory_space<vmem>>, %arg3: memref<2x128x16xf32, #tpu.memory_space<vmem>>, %arg4: memref<2x16x64xf32, #tpu.memory_space<vmem>>, %arg5: memref<2x64x16xf32, #tpu.memory_space<vmem>>, %arg6: memref<2x8x384xf32, #tpu.memory_space<vmem>>, %arg7: memref<336x384xf32, #tpu.memory_space<vmem>>, %arg8: memref<2x1xf32, #tpu.memory_space<vmem>>) attributes {dimension_semantics = [], scalar_prefetch = 0 : i64, scratch_operands = 0 : i64, tpu.core_type = #tpu.core_type<tc>} {
    %c0 = arith.constant 0 : index
    %c0_0 = arith.constant 0 : index
    %0 = vector.load %arg0[%c0, %c0_0] : memref<8x16xf32, #tpu.memory_space<vmem>>, vector<8x16xf32>
    %1 = tpu.iota {dimensions = array<i32: 0>} : vector<8x8xi32>
    %2 = tpu.iota {dimensions = array<i32: 1>} : vector<8x8xi32>
    %c1_i32 = arith.constant 1 : i32
    %3 = vector.broadcast %c1_i32 : i32 to vector<8x8xi32>
    %4 = arith.andi %1, %3 : vector<8x8xi32>
    %c1_i32_1 = arith.constant 1 : i32
    %5 = vector.broadcast %c1_i32_1 : i32 to vector<8x8xi32>
    %6 = arith.andi %2, %5 : vector<8x8xi32>
    %7 = arith.cmpi eq, %4, %6 : vector<8x8xi32>
    %cst = arith.constant 0.000000e+00 : f32
    %cst_2 = arith.constant -1.000000e+30 : f32
    %8 = vector.broadcast %cst : f32 to vector<8x8xf32>
    %9 = vector.broadcast %cst_2 : f32 to vector<8x8xf32>
    %10 = arith.select %7, %8, %9 : vector<8x8xi1>, vector<8x8xf32>
    %c0_3 = arith.constant 0 : index
    %c0_4 = arith.constant 0 : index
    %c0_5 = arith.constant 0 : index
    %11 = vector.load %arg6[%c0_3, %c0_4, %c0_5] : memref<2x8x384xf32, #tpu.memory_space<vmem>>, vector<1x8x384xf32>
    %12 = vector.shape_cast %11 : vector<1x8x384xf32> to vector<8x384xf32>
    %13 = vector.extract_strided_slice %12 {offsets = [0, 0], sizes = [1, 16], strides = [1, 1]} : vector<8x384xf32> to vector<1x16xf32>
    %14 = vector.extract_strided_slice %12 {offsets = [1, 0], sizes = [1, 16], strides = [1, 1]} : vector<8x384xf32> to vector<1x16xf32>
    %15 = vector.extract_strided_slice %12 {offsets = [2, 0], sizes = [1, 384], strides = [1, 1]} : vector<8x384xf32> to vector<1x384xf32>
    %16 = vector.extract_strided_slice %12 {offsets = [3, 0], sizes = [1, 16], strides = [1, 1]} : vector<8x384xf32> to vector<1x16xf32>
    %17 = vector.extract_strided_slice %12 {offsets = [4, 0], sizes = [1, 16], strides = [1, 1]} : vector<8x384xf32> to vector<1x16xf32>
    %18 = vector.extract_strided_slice %12 {offsets = [5, 0], sizes = [1, 16], strides = [1, 1]} : vector<8x384xf32> to vector<1x16xf32>
    %19 = vector.extract_strided_slice %12 {offsets = [6, 0], sizes = [1, 64], strides = [1, 1]} : vector<8x384xf32> to vector<1x64xf32>
    %20 = vector.extract_strided_slice %12 {offsets = [7, 0], sizes = [1, 16], strides = [1, 1]} : vector<8x384xf32> to vector<1x16xf32>
    %cst_6 = arith.constant dense<0.000000e+00> : vector<8xf32>
    %21 = vector.multi_reduction <add>, %0, %cst_6 [1] : vector<8x16xf32> to vector<8xf32>
    %22 = vector.shape_cast %21 : vector<8xf32> to vector<8x1xf32>
    %cst_7 = arith.constant 1.600000e+01 : f32
    %23 = vector.broadcast %cst_7 : f32 to vector<8x1xf32>
    %24 = arith.divf %22, %23 : vector<8x1xf32>
    %25 = vector.broadcast %24 : vector<8x1xf32> to vector<8x16xf32>
    %26 = arith.subf %0, %25 : vector<8x16xf32>
    %27 = arith.mulf %26, %26 : vector<8x16xf32>
    %cst_8 = arith.constant dense<0.000000e+00> : vector<8xf32>
    %28 = vector.multi_reduction <add>, %27, %cst_8 [1] : vector<8x16xf32> to vector<8xf32>
    %29 = vector.shape_cast %28 : vector<8xf32> to vector<8x1xf32>
    %cst_9 = arith.constant 1.600000e+01 : f32
    %30 = vector.broadcast %cst_9 : f32 to vector<8x1xf32>
    %31 = arith.divf %29, %30 : vector<8x1xf32>
    %32 = vector.broadcast %24 : vector<8x1xf32> to vector<8x16xf32>
    %33 = arith.subf %0, %32 : vector<8x16xf32>
    %cst_10 = arith.constant 9.99999974E-6 : f32
    %34 = vector.broadcast %cst_10 : f32 to vector<8x1xf32>
    %35 = arith.addf %31, %34 : vector<8x1xf32>
    %36 = math.rsqrt %35 : vector<8x1xf32>
    %37 = vector.broadcast %36 : vector<8x1xf32> to vector<8x16xf32>
    %38 = arith.mulf %33, %37 : vector<8x16xf32>
    %39 = vector.broadcast %13 : vector<1x16xf32> to vector<8x16xf32>
    %40 = arith.mulf %38, %39 : vector<8x16xf32>
    %41 = vector.broadcast %14 : vector<1x16xf32> to vector<8x16xf32>
    %42 = arith.addf %40, %41 : vector<8x16xf32>
    %c0_11 = arith.constant 0 : index
    %c0_12 = arith.constant 0 : index
    %c0_13 = arith.constant 0 : index
    %43 = vector.load %arg2[%c0_11, %c0_12, %c0_13] : memref<2x16x384xf32, #tpu.memory_space<vmem>>, vector<1x16x384xf32>
    %44 = vector.shape_cast %43 : vector<1x16x384xf32> to vector<16x384xf32>
    %cst_14 = arith.constant dense<0.000000e+00> : vector<8x384xf32>
    %45 = tpu.matmul %42, %44, %cst_14 {dimension_numbers = #tpu.dot_dimension_numbers<[1], [0], [0], [1], [0, 0, 1, 1], [], []>} : vector<8x16xf32>, vector<16x384xf32>, vector<8x384xf32> -> vector<8x384xf32>
    %46 = vector.broadcast %15 : vector<1x384xf32> to vector<8x384xf32>
    %47 = arith.addf %45, %46 : vector<8x384xf32>
    %48 = vector.extract_strided_slice %47 {offsets = [0, 0], sizes = [8, 128], strides = [1, 1]} : vector<8x384xf32> to vector<8x128xf32>
    %cst_15 = arith.constant 2.500000e-01 : f32
    %49 = vector.broadcast %cst_15 : f32 to vector<8x128xf32>
    %50 = arith.mulf %48, %49 : vector<8x128xf32>
    %51 = vector.extract_strided_slice %47 {offsets = [0, 128], sizes = [8, 128], strides = [1, 1]} : vector<8x384xf32> to vector<8x128xf32>
    %52 = vector.extract_strided_slice %47 {offsets = [0, 256], sizes = [8, 128], strides = [1, 1]} : vector<8x384xf32> to vector<8x128xf32>
    %53 = vector.extract_strided_slice %50 {offsets = [0, 0], sizes = [8, 16], strides = [1, 1]} : vector<8x128xf32> to vector<8x16xf32>
    %54 = vector.extract_strided_slice %50 {offsets = [0, 16], sizes = [8, 16], strides = [1, 1]} : vector<8x128xf32> to vector<8x16xf32>
    %55 = vector.extract_strided_slice %50 {offsets = [0, 32], sizes = [8, 16], strides = [1, 1]} : vector<8x128xf32> to vector<8x16xf32>
    %56 = vector.extract_strided_slice %50 {offsets = [0, 48], sizes = [8, 16], strides = [1, 1]} : vector<8x128xf32> to vector<8x16xf32>
    %57 = vector.extract_strided_slice %50 {offsets = [0, 64], sizes = [8, 16], strides = [1, 1]} : vector<8x128xf32> to vector<8x16xf32>
    %58 = vector.extract_strided_slice %50 {offsets = [0, 80], sizes = [8, 16], strides = [1, 1]} : vector<8x128xf32> to vector<8x16xf32>
    %59 = vector.extract_strided_slice %50 {offsets = [0, 96], sizes = [8, 16], strides = [1, 1]} : vector<8x128xf32> to vector<8x16xf32>
    %60 = vector.extract_strided_slice %50 {offsets = [0, 112], sizes = [8, 16], strides = [1, 1]} : vector<8x128xf32> to vector<8x16xf32>
    %61 = vector.shape_cast %53 : vector<8x16xf32> to vector<1x8x16xf32>
    %62 = vector.shape_cast %54 : vector<8x16xf32> to vector<1x8x16xf32>
    %63 = vector.shape_cast %55 : vector<8x16xf32> to vector<1x8x16xf32>
    %64 = vector.shape_cast %56 : vector<8x16xf32> to vector<1x8x16xf32>
    %65 = vector.shape_cast %57 : vector<8x16xf32> to vector<1x8x16xf32>
    %66 = vector.shape_cast %58 : vector<8x16xf32> to vector<1x8x16xf32>
    %67 = vector.shape_cast %59 : vector<8x16xf32> to vector<1x8x16xf32>
    %68 = vector.shape_cast %60 : vector<8x16xf32> to vector<1x8x16xf32>
    %69 = tpu.concatenate %61, %62, %63, %64, %65, %66, %67, %68 in 0 : vector<1x8x16xf32>, vector<1x8x16xf32>, vector<1x8x16xf32>, vector<1x8x16xf32>, vector<1x8x16xf32>, vector<1x8x16xf32>, vector<1x8x16xf32>, vector<1x8x16xf32> -> vector<8x8x16xf32>
    %70 = vector.extract_strided_slice %51 {offsets = [0, 0], sizes = [8, 16], strides = [1, 1]} : vector<8x128xf32> to vector<8x16xf32>
    %71 = vector.extract_strided_slice %51 {offsets = [0, 16], sizes = [8, 16], strides = [1, 1]} : vector<8x128xf32> to vector<8x16xf32>
    %72 = vector.extract_strided_slice %51 {offsets = [0, 32], sizes = [8, 16], strides = [1, 1]} : vector<8x128xf32> to vector<8x16xf32>
    %73 = vector.extract_strided_slice %51 {offsets = [0, 48], sizes = [8, 16], strides = [1, 1]} : vector<8x128xf32> to vector<8x16xf32>
    %74 = vector.extract_strided_slice %51 {offsets = [0, 64], sizes = [8, 16], strides = [1, 1]} : vector<8x128xf32> to vector<8x16xf32>
    %75 = vector.extract_strided_slice %51 {offsets = [0, 80], sizes = [8, 16], strides = [1, 1]} : vector<8x128xf32> to vector<8x16xf32>
    %76 = vector.extract_strided_slice %51 {offsets = [0, 96], sizes = [8, 16], strides = [1, 1]} : vector<8x128xf32> to vector<8x16xf32>
    %77 = vector.extract_strided_slice %51 {offsets = [0, 112], sizes = [8, 16], strides = [1, 1]} : vector<8x128xf32> to vector<8x16xf32>
    %78 = vector.shape_cast %70 : vector<8x16xf32> to vector<1x8x16xf32>
    %79 = vector.shape_cast %71 : vector<8x16xf32> to vector<1x8x16xf32>
    %80 = vector.shape_cast %72 : vector<8x16xf32> to vector<1x8x16xf32>
    %81 = vector.shape_cast %73 : vector<8x16xf32> to vector<1x8x16xf32>
    %82 = vector.shape_cast %74 : vector<8x16xf32> to vector<1x8x16xf32>
    %83 = vector.shape_cast %75 : vector<8x16xf32> to vector<1x8x16xf32>
    %84 = vector.shape_cast %76 : vector<8x16xf32> to vector<1x8x16xf32>
    %85 = vector.shape_cast %77 : vector<8x16xf32> to vector<1x8x16xf32>
    %86 = tpu.concatenate %78, %79, %80, %81, %82, %83, %84, %85 in 0 : vector<1x8x16xf32>, vector<1x8x16xf32>, vector<1x8x16xf32>, vector<1x8x16xf32>, vector<1x8x16xf32>, vector<1x8x16xf32>, vector<1x8x16xf32>, vector<1x8x16xf32> -> vector<8x8x16xf32>
    %87 = vector.extract_strided_slice %52 {offsets = [0, 0], sizes = [8, 16], strides = [1, 1]} : vector<8x128xf32> to vector<8x16xf32>
    %88 = vector.extract_strided_slice %52 {offsets = [0, 16], sizes = [8, 16], strides = [1, 1]} : vector<8x128xf32> to vector<8x16xf32>
    %89 = vector.extract_strided_slice %52 {offsets = [0, 32], sizes = [8, 16], strides = [1, 1]} : vector<8x128xf32> to vector<8x16xf32>
    %90 = vector.extract_strided_slice %52 {offsets = [0, 48], sizes = [8, 16], strides = [1, 1]} : vector<8x128xf32> to vector<8x16xf32>
    %91 = vector.extract_strided_slice %52 {offsets = [0, 64], sizes = [8, 16], strides = [1, 1]} : vector<8x128xf32> to vector<8x16xf32>
    %92 = vector.extract_strided_slice %52 {offsets = [0, 80], sizes = [8, 16], strides = [1, 1]} : vector<8x128xf32> to vector<8x16xf32>
    %93 = vector.extract_strided_slice %52 {offsets = [0, 96], sizes = [8, 16], strides = [1, 1]} : vector<8x128xf32> to vector<8x16xf32>
    %94 = vector.extract_strided_slice %52 {offsets = [0, 112], sizes = [8, 16], strides = [1, 1]} : vector<8x128xf32> to vector<8x16xf32>
    %95 = vector.shape_cast %87 : vector<8x16xf32> to vector<1x8x16xf32>
    %96 = vector.shape_cast %88 : vector<8x16xf32> to vector<1x8x16xf32>
    %97 = vector.shape_cast %89 : vector<8x16xf32> to vector<1x8x16xf32>
    %98 = vector.shape_cast %90 : vector<8x16xf32> to vector<1x8x16xf32>
    %99 = vector.shape_cast %91 : vector<8x16xf32> to vector<1x8x16xf32>
    %100 = vector.shape_cast %92 : vector<8x16xf32> to vector<1x8x16xf32>
    %101 = vector.shape_cast %93 : vector<8x16xf32> to vector<1x8x16xf32>
    %102 = vector.shape_cast %94 : vector<8x16xf32> to vector<1x8x16xf32>
    %103 = tpu.concatenate %95, %96, %97, %98, %99, %100, %101, %102 in 0 : vector<1x8x16xf32>, vector<1x8x16xf32>, vector<1x8x16xf32>, vector<1x8x16xf32>, vector<1x8x16xf32>, vector<1x8x16xf32>, vector<1x8x16xf32>, vector<1x8x16xf32> -> vector<8x8x16xf32>
    "tpu.trace_start"() <{level = 10 : i32, message = "hne,hme->hnm"}> : () -> ()
    %cst_16 = arith.constant dense<0.000000e+00> : vector<8x8x8xf32>
    %104 = tpu.matmul %69, %86, %cst_16 {dimension_numbers = #tpu.dot_dimension_numbers<[2], [2], [1], [1], [0, 0, 0, 1, 1, 1], [0], [0]>} : vector<8x8x16xf32>, vector<8x8x16xf32>, vector<8x8x8xf32> -> vector<8x8x8xf32>
    "tpu.trace_stop"() : () -> ()
    %105 = vector.shape_cast %10 : vector<8x8xf32> to vector<1x8x8xf32>
    %106 = vector.broadcast %105 : vector<1x8x8xf32> to vector<8x8x8xf32>
    %107 = arith.addf %104, %106 : vector<8x8x8xf32>
    %cst_17 = arith.constant dense<0xFF800000> : vector<8x8xf32>
    %108 = vector.multi_reduction <maximumf>, %107, %cst_17 [2] : vector<8x8x8xf32> to vector<8x8xf32>
    %109 = vector.shape_cast %108 : vector<8x8xf32> to vector<8x8x1xf32>
    %110 = vector.broadcast %109 : vector<8x8x1xf32> to vector<8x8x8xf32>
    %111 = arith.subf %107, %110 : vector<8x8x8xf32>
    %112 = math.exp %111 : vector<8x8x8xf32>
    %cst_18 = arith.constant dense<0.000000e+00> : vector<8x8xf32>
    %113 = vector.multi_reduction <add>, %112, %cst_18 [2] : vector<8x8x8xf32> to vector<8x8xf32>
    %114 = vector.shape_cast %113 : vector<8x8xf32> to vector<8x8x1xf32>
    %115 = tpu.reciprocal %114 {approx = true} : vector<8x8x1xf32> -> vector<8x8x1xf32>
    %116 = vector.broadcast %115 : vector<8x8x1xf32> to vector<8x8x8xf32>
    %117 = arith.mulf %112, %116 : vector<8x8x8xf32>
    "tpu.trace_start"() <{level = 10 : i32, message = "hnm,hme->hne"}> : () -> ()
    %cst_19 = arith.constant dense<0.000000e+00> : vector<8x8x16xf32>
    %118 = tpu.matmul %117, %103, %cst_19 {dimension_numbers = #tpu.dot_dimension_numbers<[2], [1], [1], [2], [0, 0, 0, 1, 1, 2], [0], [0]>} : vector<8x8x8xf32>, vector<8x8x16xf32>, vector<8x8x16xf32> -> vector<8x8x16xf32>
    "tpu.trace_stop"() : () -> ()
    %119 = vector.extract_strided_slice %118 {offsets = [0, 0, 0], sizes = [1, 8, 16], strides = [1, 1, 1]} : vector<8x8x16xf32> to vector<1x8x16xf32>
    %120 = vector.shape_cast %119 : vector<1x8x16xf32> to vector<8x16xf32>
    %121 = vector.extract_strided_slice %118 {offsets = [1, 0, 0], sizes = [1, 8, 16], strides = [1, 1, 1]} : vector<8x8x16xf32> to vector<1x8x16xf32>
    %122 = vector.shape_cast %121 : vector<1x8x16xf32> to vector<8x16xf32>
    %123 = vector.extract_strided_slice %118 {offsets = [2, 0, 0], sizes = [1, 8, 16], strides = [1, 1, 1]} : vector<8x8x16xf32> to vector<1x8x16xf32>
    %124 = vector.shape_cast %123 : vector<1x8x16xf32> to vector<8x16xf32>
    %125 = vector.extract_strided_slice %118 {offsets = [3, 0, 0], sizes = [1, 8, 16], strides = [1, 1, 1]} : vector<8x8x16xf32> to vector<1x8x16xf32>
    %126 = vector.shape_cast %125 : vector<1x8x16xf32> to vector<8x16xf32>
    %127 = vector.extract_strided_slice %118 {offsets = [4, 0, 0], sizes = [1, 8, 16], strides = [1, 1, 1]} : vector<8x8x16xf32> to vector<1x8x16xf32>
    %128 = vector.shape_cast %127 : vector<1x8x16xf32> to vector<8x16xf32>
    %129 = vector.extract_strided_slice %118 {offsets = [5, 0, 0], sizes = [1, 8, 16], strides = [1, 1, 1]} : vector<8x8x16xf32> to vector<1x8x16xf32>
    %130 = vector.shape_cast %129 : vector<1x8x16xf32> to vector<8x16xf32>
    %131 = vector.extract_strided_slice %118 {offsets = [6, 0, 0], sizes = [1, 8, 16], strides = [1, 1, 1]} : vector<8x8x16xf32> to vector<1x8x16xf32>
    %132 = vector.shape_cast %131 : vector<1x8x16xf32> to vector<8x16xf32>
    %133 = vector.extract_strided_slice %118 {offsets = [7, 0, 0], sizes = [1, 8, 16], strides = [1, 1, 1]} : vector<8x8x16xf32> to vector<1x8x16xf32>
    %134 = vector.shape_cast %133 : vector<1x8x16xf32> to vector<8x16xf32>
    %135 = tpu.concatenate %120, %122, %124, %126, %128, %130, %132, %134 in 1 : vector<8x16xf32>, vector<8x16xf32>, vector<8x16xf32>, vector<8x16xf32>, vector<8x16xf32>, vector<8x16xf32>, vector<8x16xf32>, vector<8x16xf32> -> vector<8x128xf32>
    %c0_20 = arith.constant 0 : index
    %c0_21 = arith.constant 0 : index
    %c0_22 = arith.constant 0 : index
    %136 = vector.load %arg3[%c0_20, %c0_21, %c0_22] : memref<2x128x16xf32, #tpu.memory_space<vmem>>, vector<1x128x16xf32>
    %137 = vector.shape_cast %136 : vector<1x128x16xf32> to vector<128x16xf32>
    %cst_23 = arith.constant dense<0.000000e+00> : vector<8x16xf32>
    %138 = tpu.matmul %135, %137, %cst_23 {dimension_numbers = #tpu.dot_dimension_numbers<[1], [0], [0], [1], [0, 0, 1, 1], [], []>} : vector<8x128xf32>, vector<128x16xf32>, vector<8x16xf32> -> vector<8x16xf32>
    %139 = arith.addf %0, %138 : vector<8x16xf32>
    %140 = vector.broadcast %16 : vector<1x16xf32> to vector<8x16xf32>
    %141 = arith.addf %139, %140 : vector<8x16xf32>
    %cst_24 = arith.constant dense<0.000000e+00> : vector<8xf32>
    %142 = vector.multi_reduction <add>, %141, %cst_24 [1] : vector<8x16xf32> to vector<8xf32>
    %143 = vector.shape_cast %142 : vector<8xf32> to vector<8x1xf32>
    %cst_25 = arith.constant 1.600000e+01 : f32
    %144 = vector.broadcast %cst_25 : f32 to vector<8x1xf32>
    %145 = arith.divf %143, %144 : vector<8x1xf32>
    %146 = vector.broadcast %145 : vector<8x1xf32> to vector<8x16xf32>
    %147 = arith.subf %141, %146 : vector<8x16xf32>
    %148 = arith.mulf %147, %147 : vector<8x16xf32>
    %cst_26 = arith.constant dense<0.000000e+00> : vector<8xf32>
    %149 = vector.multi_reduction <add>, %148, %cst_26 [1] : vector<8x16xf32> to vector<8xf32>
    %150 = vector.shape_cast %149 : vector<8xf32> to vector<8x1xf32>
    %cst_27 = arith.constant 1.600000e+01 : f32
    %151 = vector.broadcast %cst_27 : f32 to vector<8x1xf32>
    %152 = arith.divf %150, %151 : vector<8x1xf32>
    %153 = vector.broadcast %145 : vector<8x1xf32> to vector<8x16xf32>
    %154 = arith.subf %141, %153 : vector<8x16xf32>
    %cst_28 = arith.constant 9.99999974E-6 : f32
    %155 = vector.broadcast %cst_28 : f32 to vector<8x1xf32>
    %156 = arith.addf %152, %155 : vector<8x1xf32>
    %157 = math.rsqrt %156 : vector<8x1xf32>
    %158 = vector.broadcast %157 : vector<8x1xf32> to vector<8x16xf32>
    %159 = arith.mulf %154, %158 : vector<8x16xf32>
    %160 = vector.broadcast %17 : vector<1x16xf32> to vector<8x16xf32>
    %161 = arith.mulf %159, %160 : vector<8x16xf32>
    %162 = vector.broadcast %18 : vector<1x16xf32> to vector<8x16xf32>
    %163 = arith.addf %161, %162 : vector<8x16xf32>
    %c0_29 = arith.constant 0 : index
    %c0_30 = arith.constant 0 : index
    %c0_31 = arith.constant 0 : index
    %164 = vector.load %arg4[%c0_29, %c0_30, %c0_31] : memref<2x16x64xf32, #tpu.memory_space<vmem>>, vector<1x16x64xf32>
    %165 = vector.shape_cast %164 : vector<1x16x64xf32> to vector<16x64xf32>
    %cst_32 = arith.constant dense<0.000000e+00> : vector<8x64xf32>
    %166 = tpu.matmul %163, %165, %cst_32 {dimension_numbers = #tpu.dot_dimension_numbers<[1], [0], [0], [1], [0, 0, 1, 1], [], []>} : vector<8x16xf32>, vector<16x64xf32>, vector<8x64xf32> -> vector<8x64xf32>
    %167 = vector.broadcast %19 : vector<1x64xf32> to vector<8x64xf32>
    %168 = arith.addf %166, %167 : vector<8x64xf32>
    %cst_33 = arith.constant 0.000000e+00 : f32
    %169 = vector.broadcast %cst_33 : f32 to vector<8x64xf32>
    %170 = arith.maximumf %168, %169 : vector<8x64xf32>
    %c0_34 = arith.constant 0 : index
    %c0_35 = arith.constant 0 : index
    %c0_36 = arith.constant 0 : index
    %171 = vector.load %arg5[%c0_34, %c0_35, %c0_36] : memref<2x64x16xf32, #tpu.memory_space<vmem>>, vector<1x64x16xf32>
    %172 = vector.shape_cast %171 : vector<1x64x16xf32> to vector<64x16xf32>
    %cst_37 = arith.constant dense<0.000000e+00> : vector<8x16xf32>
    %173 = tpu.matmul %170, %172, %cst_37 {dimension_numbers = #tpu.dot_dimension_numbers<[1], [0], [0], [1], [0, 0, 1, 1], [], []>} : vector<8x64xf32>, vector<64x16xf32>, vector<8x16xf32> -> vector<8x16xf32>
    %174 = arith.addf %141, %173 : vector<8x16xf32>
    %175 = vector.broadcast %20 : vector<1x16xf32> to vector<8x16xf32>
    %176 = arith.addf %174, %175 : vector<8x16xf32>
    %c1 = arith.constant 1 : index
    %c0_38 = arith.constant 0 : index
    %c0_39 = arith.constant 0 : index
    %177 = vector.load %arg6[%c1, %c0_38, %c0_39] : memref<2x8x384xf32, #tpu.memory_space<vmem>>, vector<1x8x384xf32>
    %178 = vector.shape_cast %177 : vector<1x8x384xf32> to vector<8x384xf32>
    %179 = vector.extract_strided_slice %178 {offsets = [0, 0], sizes = [1, 16], strides = [1, 1]} : vector<8x384xf32> to vector<1x16xf32>
    %180 = vector.extract_strided_slice %178 {offsets = [1, 0], sizes = [1, 16], strides = [1, 1]} : vector<8x384xf32> to vector<1x16xf32>
    %181 = vector.extract_strided_slice %178 {offsets = [2, 0], sizes = [1, 384], strides = [1, 1]} : vector<8x384xf32> to vector<1x384xf32>
    %182 = vector.extract_strided_slice %178 {offsets = [3, 0], sizes = [1, 16], strides = [1, 1]} : vector<8x384xf32> to vector<1x16xf32>
    %183 = vector.extract_strided_slice %178 {offsets = [4, 0], sizes = [1, 16], strides = [1, 1]} : vector<8x384xf32> to vector<1x16xf32>
    %184 = vector.extract_strided_slice %178 {offsets = [5, 0], sizes = [1, 16], strides = [1, 1]} : vector<8x384xf32> to vector<1x16xf32>
    %185 = vector.extract_strided_slice %178 {offsets = [6, 0], sizes = [1, 64], strides = [1, 1]} : vector<8x384xf32> to vector<1x64xf32>
    %186 = vector.extract_strided_slice %178 {offsets = [7, 0], sizes = [1, 16], strides = [1, 1]} : vector<8x384xf32> to vector<1x16xf32>
    %cst_40 = arith.constant dense<0.000000e+00> : vector<8xf32>
    %187 = vector.multi_reduction <add>, %176, %cst_40 [1] : vector<8x16xf32> to vector<8xf32>
    %188 = vector.shape_cast %187 : vector<8xf32> to vector<8x1xf32>
    %cst_41 = arith.constant 1.600000e+01 : f32
    %189 = vector.broadcast %cst_41 : f32 to vector<8x1xf32>
    %190 = arith.divf %188, %189 : vector<8x1xf32>
    %191 = vector.broadcast %190 : vector<8x1xf32> to vector<8x16xf32>
    %192 = arith.subf %176, %191 : vector<8x16xf32>
    %193 = arith.mulf %192, %192 : vector<8x16xf32>
    %cst_42 = arith.constant dense<0.000000e+00> : vector<8xf32>
    %194 = vector.multi_reduction <add>, %193, %cst_42 [1] : vector<8x16xf32> to vector<8xf32>
    %195 = vector.shape_cast %194 : vector<8xf32> to vector<8x1xf32>
    %cst_43 = arith.constant 1.600000e+01 : f32
    %196 = vector.broadcast %cst_43 : f32 to vector<8x1xf32>
    %197 = arith.divf %195, %196 : vector<8x1xf32>
    %198 = vector.broadcast %190 : vector<8x1xf32> to vector<8x16xf32>
    %199 = arith.subf %176, %198 : vector<8x16xf32>
    %cst_44 = arith.constant 9.99999974E-6 : f32
    %200 = vector.broadcast %cst_44 : f32 to vector<8x1xf32>
    %201 = arith.addf %197, %200 : vector<8x1xf32>
    %202 = math.rsqrt %201 : vector<8x1xf32>
    %203 = vector.broadcast %202 : vector<8x1xf32> to vector<8x16xf32>
    %204 = arith.mulf %199, %203 : vector<8x16xf32>
    %205 = vector.broadcast %179 : vector<1x16xf32> to vector<8x16xf32>
    %206 = arith.mulf %204, %205 : vector<8x16xf32>
    %207 = vector.broadcast %180 : vector<1x16xf32> to vector<8x16xf32>
    %208 = arith.addf %206, %207 : vector<8x16xf32>
    %c1_45 = arith.constant 1 : index
    %c0_46 = arith.constant 0 : index
    %c0_47 = arith.constant 0 : index
    %209 = vector.load %arg2[%c1_45, %c0_46, %c0_47] : memref<2x16x384xf32, #tpu.memory_space<vmem>>, vector<1x16x384xf32>
    %210 = vector.shape_cast %209 : vector<1x16x384xf32> to vector<16x384xf32>
    %cst_48 = arith.constant dense<0.000000e+00> : vector<8x384xf32>
    %211 = tpu.matmul %208, %210, %cst_48 {dimension_numbers = #tpu.dot_dimension_numbers<[1], [0], [0], [1], [0, 0, 1, 1], [], []>} : vector<8x16xf32>, vector<16x384xf32>, vector<8x384xf32> -> vector<8x384xf32>
    %212 = vector.broadcast %181 : vector<1x384xf32> to vector<8x384xf32>
    %213 = arith.addf %211, %212 : vector<8x384xf32>
    %214 = vector.extract_strided_slice %213 {offsets = [0, 0], sizes = [8, 128], strides = [1, 1]} : vector<8x384xf32> to vector<8x128xf32>
    %cst_49 = arith.constant 2.500000e-01 : f32
    %215 = vector.broadcast %cst_49 : f32 to vector<8x128xf32>
    %216 = arith.mulf %214, %215 : vector<8x128xf32>
    %217 = vector.extract_strided_slice %213 {offsets = [0, 128], sizes = [8, 128], strides = [1, 1]} : vector<8x384xf32> to vector<8x128xf32>
    %218 = vector.extract_strided_slice %213 {offsets = [0, 256], sizes = [8, 128], strides = [1, 1]} : vector<8x384xf32> to vector<8x128xf32>
    %219 = vector.extract_strided_slice %216 {offsets = [0, 0], sizes = [8, 16], strides = [1, 1]} : vector<8x128xf32> to vector<8x16xf32>
    %220 = vector.extract_strided_slice %216 {offsets = [0, 16], sizes = [8, 16], strides = [1, 1]} : vector<8x128xf32> to vector<8x16xf32>
    %221 = vector.extract_strided_slice %216 {offsets = [0, 32], sizes = [8, 16], strides = [1, 1]} : vector<8x128xf32> to vector<8x16xf32>
    %222 = vector.extract_strided_slice %216 {offsets = [0, 48], sizes = [8, 16], strides = [1, 1]} : vector<8x128xf32> to vector<8x16xf32>
    %223 = vector.extract_strided_slice %216 {offsets = [0, 64], sizes = [8, 16], strides = [1, 1]} : vector<8x128xf32> to vector<8x16xf32>
    %224 = vector.extract_strided_slice %216 {offsets = [0, 80], sizes = [8, 16], strides = [1, 1]} : vector<8x128xf32> to vector<8x16xf32>
    %225 = vector.extract_strided_slice %216 {offsets = [0, 96], sizes = [8, 16], strides = [1, 1]} : vector<8x128xf32> to vector<8x16xf32>
    %226 = vector.extract_strided_slice %216 {offsets = [0, 112], sizes = [8, 16], strides = [1, 1]} : vector<8x128xf32> to vector<8x16xf32>
    %227 = vector.shape_cast %219 : vector<8x16xf32> to vector<1x8x16xf32>
    %228 = vector.shape_cast %220 : vector<8x16xf32> to vector<1x8x16xf32>
    %229 = vector.shape_cast %221 : vector<8x16xf32> to vector<1x8x16xf32>
    %230 = vector.shape_cast %222 : vector<8x16xf32> to vector<1x8x16xf32>
    %231 = vector.shape_cast %223 : vector<8x16xf32> to vector<1x8x16xf32>
    %232 = vector.shape_cast %224 : vector<8x16xf32> to vector<1x8x16xf32>
    %233 = vector.shape_cast %225 : vector<8x16xf32> to vector<1x8x16xf32>
    %234 = vector.shape_cast %226 : vector<8x16xf32> to vector<1x8x16xf32>
    %235 = tpu.concatenate %227, %228, %229, %230, %231, %232, %233, %234 in 0 : vector<1x8x16xf32>, vector<1x8x16xf32>, vector<1x8x16xf32>, vector<1x8x16xf32>, vector<1x8x16xf32>, vector<1x8x16xf32>, vector<1x8x16xf32>, vector<1x8x16xf32> -> vector<8x8x16xf32>
    %236 = vector.extract_strided_slice %217 {offsets = [0, 0], sizes = [8, 16], strides = [1, 1]} : vector<8x128xf32> to vector<8x16xf32>
    %237 = vector.extract_strided_slice %217 {offsets = [0, 16], sizes = [8, 16], strides = [1, 1]} : vector<8x128xf32> to vector<8x16xf32>
    %238 = vector.extract_strided_slice %217 {offsets = [0, 32], sizes = [8, 16], strides = [1, 1]} : vector<8x128xf32> to vector<8x16xf32>
    %239 = vector.extract_strided_slice %217 {offsets = [0, 48], sizes = [8, 16], strides = [1, 1]} : vector<8x128xf32> to vector<8x16xf32>
    %240 = vector.extract_strided_slice %217 {offsets = [0, 64], sizes = [8, 16], strides = [1, 1]} : vector<8x128xf32> to vector<8x16xf32>
    %241 = vector.extract_strided_slice %217 {offsets = [0, 80], sizes = [8, 16], strides = [1, 1]} : vector<8x128xf32> to vector<8x16xf32>
    %242 = vector.extract_strided_slice %217 {offsets = [0, 96], sizes = [8, 16], strides = [1, 1]} : vector<8x128xf32> to vector<8x16xf32>
    %243 = vector.extract_strided_slice %217 {offsets = [0, 112], sizes = [8, 16], strides = [1, 1]} : vector<8x128xf32> to vector<8x16xf32>
    %244 = vector.shape_cast %236 : vector<8x16xf32> to vector<1x8x16xf32>
    %245 = vector.shape_cast %237 : vector<8x16xf32> to vector<1x8x16xf32>
    %246 = vector.shape_cast %238 : vector<8x16xf32> to vector<1x8x16xf32>
    %247 = vector.shape_cast %239 : vector<8x16xf32> to vector<1x8x16xf32>
    %248 = vector.shape_cast %240 : vector<8x16xf32> to vector<1x8x16xf32>
    %249 = vector.shape_cast %241 : vector<8x16xf32> to vector<1x8x16xf32>
    %250 = vector.shape_cast %242 : vector<8x16xf32> to vector<1x8x16xf32>
    %251 = vector.shape_cast %243 : vector<8x16xf32> to vector<1x8x16xf32>
    %252 = tpu.concatenate %244, %245, %246, %247, %248, %249, %250, %251 in 0 : vector<1x8x16xf32>, vector<1x8x16xf32>, vector<1x8x16xf32>, vector<1x8x16xf32>, vector<1x8x16xf32>, vector<1x8x16xf32>, vector<1x8x16xf32>, vector<1x8x16xf32> -> vector<8x8x16xf32>
    %253 = vector.extract_strided_slice %218 {offsets = [0, 0], sizes = [8, 16], strides = [1, 1]} : vector<8x128xf32> to vector<8x16xf32>
    %254 = vector.extract_strided_slice %218 {offsets = [0, 16], sizes = [8, 16], strides = [1, 1]} : vector<8x128xf32> to vector<8x16xf32>
    %255 = vector.extract_strided_slice %218 {offsets = [0, 32], sizes = [8, 16], strides = [1, 1]} : vector<8x128xf32> to vector<8x16xf32>
    %256 = vector.extract_strided_slice %218 {offsets = [0, 48], sizes = [8, 16], strides = [1, 1]} : vector<8x128xf32> to vector<8x16xf32>
    %257 = vector.extract_strided_slice %218 {offsets = [0, 64], sizes = [8, 16], strides = [1, 1]} : vector<8x128xf32> to vector<8x16xf32>
    %258 = vector.extract_strided_slice %218 {offsets = [0, 80], sizes = [8, 16], strides = [1, 1]} : vector<8x128xf32> to vector<8x16xf32>
    %259 = vector.extract_strided_slice %218 {offsets = [0, 96], sizes = [8, 16], strides = [1, 1]} : vector<8x128xf32> to vector<8x16xf32>
    %260 = vector.extract_strided_slice %218 {offsets = [0, 112], sizes = [8, 16], strides = [1, 1]} : vector<8x128xf32> to vector<8x16xf32>
    %261 = vector.shape_cast %253 : vector<8x16xf32> to vector<1x8x16xf32>
    %262 = vector.shape_cast %254 : vector<8x16xf32> to vector<1x8x16xf32>
    %263 = vector.shape_cast %255 : vector<8x16xf32> to vector<1x8x16xf32>
    %264 = vector.shape_cast %256 : vector<8x16xf32> to vector<1x8x16xf32>
    %265 = vector.shape_cast %257 : vector<8x16xf32> to vector<1x8x16xf32>
    %266 = vector.shape_cast %258 : vector<8x16xf32> to vector<1x8x16xf32>
    %267 = vector.shape_cast %259 : vector<8x16xf32> to vector<1x8x16xf32>
    %268 = vector.shape_cast %260 : vector<8x16xf32> to vector<1x8x16xf32>
    %269 = tpu.concatenate %261, %262, %263, %264, %265, %266, %267, %268 in 0 : vector<1x8x16xf32>, vector<1x8x16xf32>, vector<1x8x16xf32>, vector<1x8x16xf32>, vector<1x8x16xf32>, vector<1x8x16xf32>, vector<1x8x16xf32>, vector<1x8x16xf32> -> vector<8x8x16xf32>
    "tpu.trace_start"() <{level = 10 : i32, message = "hne,hme->hnm"}> : () -> ()
    %cst_50 = arith.constant dense<0.000000e+00> : vector<8x8x8xf32>
    %270 = tpu.matmul %235, %252, %cst_50 {dimension_numbers = #tpu.dot_dimension_numbers<[2], [2], [1], [1], [0, 0, 0, 1, 1, 1], [0], [0]>} : vector<8x8x16xf32>, vector<8x8x16xf32>, vector<8x8x8xf32> -> vector<8x8x8xf32>
    "tpu.trace_stop"() : () -> ()
    %271 = vector.shape_cast %10 : vector<8x8xf32> to vector<1x8x8xf32>
    %272 = vector.broadcast %271 : vector<1x8x8xf32> to vector<8x8x8xf32>
    %273 = arith.addf %270, %272 : vector<8x8x8xf32>
    %cst_51 = arith.constant dense<0xFF800000> : vector<8x8xf32>
    %274 = vector.multi_reduction <maximumf>, %273, %cst_51 [2] : vector<8x8x8xf32> to vector<8x8xf32>
    %275 = vector.shape_cast %274 : vector<8x8xf32> to vector<8x8x1xf32>
    %276 = vector.broadcast %275 : vector<8x8x1xf32> to vector<8x8x8xf32>
    %277 = arith.subf %273, %276 : vector<8x8x8xf32>
    %278 = math.exp %277 : vector<8x8x8xf32>
    %cst_52 = arith.constant dense<0.000000e+00> : vector<8x8xf32>
    %279 = vector.multi_reduction <add>, %278, %cst_52 [2] : vector<8x8x8xf32> to vector<8x8xf32>
    %280 = vector.shape_cast %279 : vector<8x8xf32> to vector<8x8x1xf32>
    %281 = tpu.reciprocal %280 {approx = true} : vector<8x8x1xf32> -> vector<8x8x1xf32>
    %282 = vector.broadcast %281 : vector<8x8x1xf32> to vector<8x8x8xf32>
    %283 = arith.mulf %278, %282 : vector<8x8x8xf32>
    "tpu.trace_start"() <{level = 10 : i32, message = "hnm,hme->hne"}> : () -> ()
    %cst_53 = arith.constant dense<0.000000e+00> : vector<8x8x16xf32>
    %284 = tpu.matmul %283, %269, %cst_53 {dimension_numbers = #tpu.dot_dimension_numbers<[2], [1], [1], [2], [0, 0, 0, 1, 1, 2], [0], [0]>} : vector<8x8x8xf32>, vector<8x8x16xf32>, vector<8x8x16xf32> -> vector<8x8x16xf32>
    "tpu.trace_stop"() : () -> ()
    %285 = vector.extract_strided_slice %284 {offsets = [0, 0, 0], sizes = [1, 8, 16], strides = [1, 1, 1]} : vector<8x8x16xf32> to vector<1x8x16xf32>
    %286 = vector.shape_cast %285 : vector<1x8x16xf32> to vector<8x16xf32>
    %287 = vector.extract_strided_slice %284 {offsets = [1, 0, 0], sizes = [1, 8, 16], strides = [1, 1, 1]} : vector<8x8x16xf32> to vector<1x8x16xf32>
    %288 = vector.shape_cast %287 : vector<1x8x16xf32> to vector<8x16xf32>
    %289 = vector.extract_strided_slice %284 {offsets = [2, 0, 0], sizes = [1, 8, 16], strides = [1, 1, 1]} : vector<8x8x16xf32> to vector<1x8x16xf32>
    %290 = vector.shape_cast %289 : vector<1x8x16xf32> to vector<8x16xf32>
    %291 = vector.extract_strided_slice %284 {offsets = [3, 0, 0], sizes = [1, 8, 16], strides = [1, 1, 1]} : vector<8x8x16xf32> to vector<1x8x16xf32>
    %292 = vector.shape_cast %291 : vector<1x8x16xf32> to vector<8x16xf32>
    %293 = vector.extract_strided_slice %284 {offsets = [4, 0, 0], sizes = [1, 8, 16], strides = [1, 1, 1]} : vector<8x8x16xf32> to vector<1x8x16xf32>
    %294 = vector.shape_cast %293 : vector<1x8x16xf32> to vector<8x16xf32>
    %295 = vector.extract_strided_slice %284 {offsets = [5, 0, 0], sizes = [1, 8, 16], strides = [1, 1, 1]} : vector<8x8x16xf32> to vector<1x8x16xf32>
    %296 = vector.shape_cast %295 : vector<1x8x16xf32> to vector<8x16xf32>
    %297 = vector.extract_strided_slice %284 {offsets = [6, 0, 0], sizes = [1, 8, 16], strides = [1, 1, 1]} : vector<8x8x16xf32> to vector<1x8x16xf32>
    %298 = vector.shape_cast %297 : vector<1x8x16xf32> to vector<8x16xf32>
    %299 = vector.extract_strided_slice %284 {offsets = [7, 0, 0], sizes = [1, 8, 16], strides = [1, 1, 1]} : vector<8x8x16xf32> to vector<1x8x16xf32>
    %300 = vector.shape_cast %299 : vector<1x8x16xf32> to vector<8x16xf32>
    %301 = tpu.concatenate %286, %288, %290, %292, %294, %296, %298, %300 in 1 : vector<8x16xf32>, vector<8x16xf32>, vector<8x16xf32>, vector<8x16xf32>, vector<8x16xf32>, vector<8x16xf32>, vector<8x16xf32>, vector<8x16xf32> -> vector<8x128xf32>
    %c1_54 = arith.constant 1 : index
    %c0_55 = arith.constant 0 : index
    %c0_56 = arith.constant 0 : index
    %302 = vector.load %arg3[%c1_54, %c0_55, %c0_56] : memref<2x128x16xf32, #tpu.memory_space<vmem>>, vector<1x128x16xf32>
    %303 = vector.shape_cast %302 : vector<1x128x16xf32> to vector<128x16xf32>
    %cst_57 = arith.constant dense<0.000000e+00> : vector<8x16xf32>
    %304 = tpu.matmul %301, %303, %cst_57 {dimension_numbers = #tpu.dot_dimension_numbers<[1], [0], [0], [1], [0, 0, 1, 1], [], []>} : vector<8x128xf32>, vector<128x16xf32>, vector<8x16xf32> -> vector<8x16xf32>
    %305 = arith.addf %176, %304 : vector<8x16xf32>
    %306 = vector.broadcast %182 : vector<1x16xf32> to vector<8x16xf32>
    %307 = arith.addf %305, %306 : vector<8x16xf32>
    %cst_58 = arith.constant dense<0.000000e+00> : vector<8xf32>
    %308 = vector.multi_reduction <add>, %307, %cst_58 [1] : vector<8x16xf32> to vector<8xf32>
    %309 = vector.shape_cast %308 : vector<8xf32> to vector<8x1xf32>
    %cst_59 = arith.constant 1.600000e+01 : f32
    %310 = vector.broadcast %cst_59 : f32 to vector<8x1xf32>
    %311 = arith.divf %309, %310 : vector<8x1xf32>
    %312 = vector.broadcast %311 : vector<8x1xf32> to vector<8x16xf32>
    %313 = arith.subf %307, %312 : vector<8x16xf32>
    %314 = arith.mulf %313, %313 : vector<8x16xf32>
    %cst_60 = arith.constant dense<0.000000e+00> : vector<8xf32>
    %315 = vector.multi_reduction <add>, %314, %cst_60 [1] : vector<8x16xf32> to vector<8xf32>
    %316 = vector.shape_cast %315 : vector<8xf32> to vector<8x1xf32>
    %cst_61 = arith.constant 1.600000e+01 : f32
    %317 = vector.broadcast %cst_61 : f32 to vector<8x1xf32>
    %318 = arith.divf %316, %317 : vector<8x1xf32>
    %319 = vector.broadcast %311 : vector<8x1xf32> to vector<8x16xf32>
    %320 = arith.subf %307, %319 : vector<8x16xf32>
    %cst_62 = arith.constant 9.99999974E-6 : f32
    %321 = vector.broadcast %cst_62 : f32 to vector<8x1xf32>
    %322 = arith.addf %318, %321 : vector<8x1xf32>
    %323 = math.rsqrt %322 : vector<8x1xf32>
    %324 = vector.broadcast %323 : vector<8x1xf32> to vector<8x16xf32>
    %325 = arith.mulf %320, %324 : vector<8x16xf32>
    %326 = vector.broadcast %183 : vector<1x16xf32> to vector<8x16xf32>
    %327 = arith.mulf %325, %326 : vector<8x16xf32>
    %328 = vector.broadcast %184 : vector<1x16xf32> to vector<8x16xf32>
    %329 = arith.addf %327, %328 : vector<8x16xf32>
    %c1_63 = arith.constant 1 : index
    %c0_64 = arith.constant 0 : index
    %c0_65 = arith.constant 0 : index
    %330 = vector.load %arg4[%c1_63, %c0_64, %c0_65] : memref<2x16x64xf32, #tpu.memory_space<vmem>>, vector<1x16x64xf32>
    %331 = vector.shape_cast %330 : vector<1x16x64xf32> to vector<16x64xf32>
    %cst_66 = arith.constant dense<0.000000e+00> : vector<8x64xf32>
    %332 = tpu.matmul %329, %331, %cst_66 {dimension_numbers = #tpu.dot_dimension_numbers<[1], [0], [0], [1], [0, 0, 1, 1], [], []>} : vector<8x16xf32>, vector<16x64xf32>, vector<8x64xf32> -> vector<8x64xf32>
    %333 = vector.broadcast %185 : vector<1x64xf32> to vector<8x64xf32>
    %334 = arith.addf %332, %333 : vector<8x64xf32>
    %cst_67 = arith.constant 0.000000e+00 : f32
    %335 = vector.broadcast %cst_67 : f32 to vector<8x64xf32>
    %336 = arith.maximumf %334, %335 : vector<8x64xf32>
    %c1_68 = arith.constant 1 : index
    %c0_69 = arith.constant 0 : index
    %c0_70 = arith.constant 0 : index
    %337 = vector.load %arg5[%c1_68, %c0_69, %c0_70] : memref<2x64x16xf32, #tpu.memory_space<vmem>>, vector<1x64x16xf32>
    %338 = vector.shape_cast %337 : vector<1x64x16xf32> to vector<64x16xf32>
    %cst_71 = arith.constant dense<0.000000e+00> : vector<8x16xf32>
    %339 = tpu.matmul %336, %338, %cst_71 {dimension_numbers = #tpu.dot_dimension_numbers<[1], [0], [0], [1], [0, 0, 1, 1], [], []>} : vector<8x64xf32>, vector<64x16xf32>, vector<8x16xf32> -> vector<8x16xf32>
    %340 = arith.addf %307, %339 : vector<8x16xf32>
    %341 = vector.broadcast %186 : vector<1x16xf32> to vector<8x16xf32>
    %342 = arith.addf %340, %341 : vector<8x16xf32>
    %c0_72 = arith.constant 0 : index
    %c0_73 = arith.constant 0 : index
    %343 = vector.load %arg7[%c0_72, %c0_73] : memref<336x384xf32, #tpu.memory_space<vmem>>, vector<1x3xf32>
    %c1_74 = arith.constant 1 : index
    %c0_75 = arith.constant 0 : index
    %344 = vector.load %arg7[%c1_74, %c0_75] : memref<336x384xf32, #tpu.memory_space<vmem>>, vector<1x3xf32>
    %c2 = arith.constant 2 : index
    %c0_76 = arith.constant 0 : index
    %345 = vector.load %arg7[%c2, %c0_76] : memref<336x384xf32, #tpu.memory_space<vmem>>, vector<1x256xf32>
    %c3 = arith.constant 3 : index
    %c0_77 = arith.constant 0 : index
    %346 = vector.load %arg7[%c3, %c0_77] : memref<336x384xf32, #tpu.memory_space<vmem>>, vector<1x384xf32>
    %c4 = arith.constant 4 : index
    %c0_78 = arith.constant 0 : index
    %347 = vector.load %arg7[%c4, %c0_78] : memref<336x384xf32, #tpu.memory_space<vmem>>, vector<1x1xf32>
    %c5 = arith.constant 5 : index
    %c0_79 = arith.constant 0 : index
    %348 = vector.load %arg7[%c5, %c0_79] : memref<336x384xf32, #tpu.memory_space<vmem>>, vector<1x384xf32>
    %c8 = arith.constant 8 : index
    %c0_80 = arith.constant 0 : index
    %349 = vector.load %arg7[%c8, %c0_80] : memref<336x384xf32, #tpu.memory_space<vmem>>, vector<67x256xf32>
    %c80 = arith.constant 80 : index
    %c0_81 = arith.constant 0 : index
    %350 = vector.load %arg7[%c80, %c0_81] : memref<336x384xf32, #tpu.memory_space<vmem>>, vector<256x384xf32>
    %c0_82 = arith.constant 0 : index
    %c0_83 = arith.constant 0 : index
    %351 = vector.load %arg1[%c0_82, %c0_83] : memref<2x3xf32, #tpu.memory_space<vmem>>, vector<2x3xf32>
    %cst_84 = arith.constant dense<0.000000e+00> : vector<2xf32>
    %352 = vector.multi_reduction <add>, %351, %cst_84 [1] : vector<2x3xf32> to vector<2xf32>
    %353 = vector.shape_cast %352 : vector<2xf32> to vector<2x1xf32>
    %cst_85 = arith.constant 3.000000e+00 : f32
    %354 = vector.broadcast %cst_85 : f32 to vector<2x1xf32>
    %355 = arith.divf %353, %354 : vector<2x1xf32>
    %356 = vector.broadcast %355 : vector<2x1xf32> to vector<2x3xf32>
    %357 = arith.subf %351, %356 : vector<2x3xf32>
    %358 = arith.mulf %357, %357 : vector<2x3xf32>
    %cst_86 = arith.constant dense<0.000000e+00> : vector<2xf32>
    %359 = vector.multi_reduction <add>, %358, %cst_86 [1] : vector<2x3xf32> to vector<2xf32>
    %360 = vector.shape_cast %359 : vector<2xf32> to vector<2x1xf32>
    %cst_87 = arith.constant 3.000000e+00 : f32
    %361 = vector.broadcast %cst_87 : f32 to vector<2x1xf32>
    %362 = arith.divf %360, %361 : vector<2x1xf32>
    %363 = vector.broadcast %355 : vector<2x1xf32> to vector<2x3xf32>
    %364 = arith.subf %351, %363 : vector<2x3xf32>
    %cst_88 = arith.constant 9.99999974E-6 : f32
    %365 = vector.broadcast %cst_88 : f32 to vector<2x1xf32>
    %366 = arith.addf %362, %365 : vector<2x1xf32>
    %367 = math.rsqrt %366 : vector<2x1xf32>
    %368 = vector.broadcast %367 : vector<2x1xf32> to vector<2x3xf32>
    %369 = arith.mulf %364, %368 : vector<2x3xf32>
    %370 = vector.broadcast %343 : vector<1x3xf32> to vector<2x3xf32>
    %371 = arith.mulf %369, %370 : vector<2x3xf32>
    %372 = vector.broadcast %344 : vector<1x3xf32> to vector<2x3xf32>
    %373 = arith.addf %371, %372 : vector<2x3xf32>
    %374 = vector.extract_strided_slice %342 {offsets = [0, 0], sizes = [2, 16], strides = [1, 1]} : vector<8x16xf32> to vector<2x16xf32>
    %375 = vector.extract_strided_slice %342 {offsets = [2, 0], sizes = [2, 16], strides = [1, 1]} : vector<8x16xf32> to vector<2x16xf32>
    %376 = vector.extract_strided_slice %342 {offsets = [4, 0], sizes = [2, 16], strides = [1, 1]} : vector<8x16xf32> to vector<2x16xf32>
    %377 = vector.extract_strided_slice %342 {offsets = [6, 0], sizes = [2, 16], strides = [1, 1]} : vector<8x16xf32> to vector<2x16xf32>
    %378 = tpu.concatenate %374, %375, %376, %377, %373 in 1 : vector<2x16xf32>, vector<2x16xf32>, vector<2x16xf32>, vector<2x16xf32>, vector<2x3xf32> -> vector<2x67xf32>
    %cst_89 = arith.constant dense<0.000000e+00> : vector<2x256xf32>
    %379 = tpu.matmul %378, %349, %cst_89 {dimension_numbers = #tpu.dot_dimension_numbers<[1], [0], [0], [1], [0, 0, 1, 1], [], []>} : vector<2x67xf32>, vector<67x256xf32>, vector<2x256xf32> -> vector<2x256xf32>
    %380 = vector.broadcast %345 : vector<1x256xf32> to vector<2x256xf32>
    %381 = arith.addf %379, %380 : vector<2x256xf32>
    %cst_90 = arith.constant 0.000000e+00 : f32
    %382 = vector.broadcast %cst_90 : f32 to vector<2x256xf32>
    %383 = arith.maximumf %381, %382 : vector<2x256xf32>
    %cst_91 = arith.constant dense<0.000000e+00> : vector<2x384xf32>
    %384 = tpu.matmul %383, %350, %cst_91 {dimension_numbers = #tpu.dot_dimension_numbers<[1], [0], [0], [1], [0, 0, 1, 1], [], []>} : vector<2x256xf32>, vector<256x384xf32>, vector<2x384xf32> -> vector<2x384xf32>
    %385 = vector.broadcast %346 : vector<1x384xf32> to vector<2x384xf32>
    %386 = arith.addf %384, %385 : vector<2x384xf32>
    %cst_92 = arith.constant 0.000000e+00 : f32
    %387 = vector.broadcast %cst_92 : f32 to vector<2x384xf32>
    %388 = arith.maximumf %386, %387 : vector<2x384xf32>
    %389 = vector.broadcast %348 : vector<1x384xf32> to vector<2x384xf32>
    %390 = arith.mulf %388, %389 : vector<2x384xf32>
    %cst_93 = arith.constant dense<0.000000e+00> : vector<2xf32>
    %391 = vector.multi_reduction <add>, %390, %cst_93 [1] : vector<2x384xf32> to vector<2xf32>
    %392 = vector.shape_cast %391 : vector<2xf32> to vector<2x1xf32>
    %393 = vector.broadcast %347 : vector<1x1xf32> to vector<2x1xf32>
    %394 = arith.addf %392, %393 : vector<2x1xf32>
    %c0_94 = arith.constant 0 : index
    %c0_95 = arith.constant 0 : index
    %395 = vector.load %arg8[%c0_94, %c0_95] : memref<2x1xf32, #tpu.memory_space<vmem>>, vector<2x1xf32>
    tpu.vector_store %arg8[%c0_94, %c0_95], %394 {strides = array<i32>} : memref<2x1xf32, #tpu.memory_space<vmem>>, vector<2x1xf32>,
    return
  }
}

</mosaic_0001>

<bundles_post_ra>
// kernel: tab_transformer_forward.1
= control target key start
LH: loop header
LB: loop body
LE: loop exit
PB: predicated region body
PF: predicated region fallthrough
CT: control target
= control target key end

     0   :  { %vm41_vm0 = vcmask 130048   ;;  %v4992_v10 = vmov 0.0   ;;  %v4993_v14 = vmov 0.0|0.0   ;;  %vm4994_vm1 = vmmov 0   ;;  %s4995_s22 = smov 96   ;;  %s4996_s23 = smov 112   ;;  %s6106_s0 = inlined_call_operand.vmem [shape: f32[8,16], index: 0, kind: input, shape index: {}]   ;;  %s6107_s2 = inlined_call_operand.vmem [shape: f32[2,16,384], index: 2, kind: input, shape index: {}]   ;;  %s6108_s6 = inlined_call_operand.vmem [shape: f32[2,8,384], index: 6, kind: input, shape index: {}]   ;;  %s6109_s3 = inlined_call_operand.vmem [shape: f32[2,128,16], index: 3, kind: input, shape index: {}]   ;;  %s6110_s4 = inlined_call_operand.vmem [shape: f32[2,16,64], index: 4, kind: input, shape index: {}]   ;;  %s6111_s5 = inlined_call_operand.vmem [shape: f32[2,64,16], index: 5, kind: input, shape index: {}]   ;;  %s6112_s1 = inlined_call_operand.vmem [shape: f32[2,3], index: 1, kind: input, shape index: {}]   ;;  %s6113_s7 = inlined_call_operand.vmem [shape: f32[336,384], index: 7, kind: input, shape index: {}]   ;;  %s6114_s8 = inlined_call_operand.vmem [shape: f32[2,1], index: 8, kind: output, shape index: {}]  }
   0x1   :  { %v5051_v0 = vld [vmem:[%s6106_s0] sm:$0xff]  ;;  %v67_v7 = vld [vmem:[%s6107_s2 + $0x8] sm:$0xff]  ;;  %151 = vmatprep.mubr.f32.mxu1 %v4992_v10  ;;  %4414 = vmatprep.subr.mxu0 %v4992_v10  ;;  %v69_v12 = vld [vmem:[%s6107_s2 + $0x18] sm:$0xff]  ;;  %v30_v17 = vlaneseq  ;;  %s4997_s24 = smov 16   ;;  %s4998_s25 = smov 80   ;;  %vm873_vm3 = vcmask 64512  }
   0x2   :  { %v42_v1 = vsel %vm41_vm0, %v5051_v0, 0.0  ;;  %v70_v8 = vld [vmem:[%s6107_s2 + $0x20] sm:$0xff]  ;;  %4416 = vmatprep.mubr.msk.f32.mxu0 %vm4994_vm1, %v4992_v10  ;;  %v68_v27 = vld [vmem:[%s6107_s2 + $0x10] sm:$0xff]  ;;  %v71_v28 = vld [vmem:[%s6107_s2 + $0x28] sm:$0xff]  ;;  %s4999_s26 = smov 48   ;;  %s5000_s27 = smov 64  }
   0x3   :  { %43 = vadd.xlane.f32.xlu0 %v42_v1  ;;  %v66_v9 = vld [vmem:[%s6107_s2] sm:$0xff]  ;;  %v4703_v11 = vpack.c.bf16 %v70_v8, %v67_v7  ;;  %v5075_v19 = vshrl.u32 %v30_v17, 7  ;;  %v4708_v30 = vpack.c.bf16 %v71_v28, %v68_v27  ;;  %v39_v33 = vld [vmem:[%s6108_s6 + $0x8] sm:$0xff]  ;;  %s5001_s28 = smov 32   ;;  %v40_v53 = vld [vmem:[%s6108_s6 + $0x10] sm:$0xff]  ;;  %v33_v60 = vand.u32 127, %v30_v17 }
   0x4   :  { %v4705_v13 = vpack.c.bf16 %v69_v12, %v66_v9  ;;  %v5083_v21 = vld [vmem:[%s6108_s6] sm:$0xff]  ;;  %v5002_v63 = vmov -1e+30   ;;  %vm1575_vm4 = vcmask 261120   ;;  %vm1577_vm5 = vcmask 392192  }
   0x5   :  { %4704 = vmatprep.subr.bf16.mxu1 %v4703_v11  ;;  %v5078_v20 = vsub.s32 0, %v5075_v19  ;;  %v5086_v22 = vsub.s32 1, %v5075_v19  ;;  %v5106_v32 = vsub.s32 2, %v5075_v19  ;;  %v35_v61 = vand.u32 1, %v33_v60 }
   0x6   :  { %4706 = vmatpush1.bf16.msra.mxu1 %v4705_v13  ;;  %v34_v62 = vand.u32 1, %v5075_v19  ;;  %vm1579_vm6 = vcmask 523264   ;;  %vm1581_vm7 = vcmask 654336   ;;  %vm1583_vm8 = vcmask 785408  }
   0x7   :  { %4707 = vmatprep.subr.bf16.mxu1 %v4993_v14  ;;  %v59_v23 = vrot.slane %v5083_v21, %v5078_v20  ;;  %v64_v26 = vrot.slane %v5083_v21, %v5086_v22  ;;  %v75_v34 = vrot.slane %v5083_v21, %v5106_v32  ;;  %v79_v35 = vrot.slane %v39_v33, %v5106_v32 }
   0x8   :  { %v83_v55 = vrot.slane %v40_v53, %v5106_v32  ;;  %vm36_vm2 = vcmp.eq.s32.totalorder %v34_v62, %v35_v61  ;;  %vm1585_vm9 = vcmask 916480   ;;  %vm3820_vm10 = vcmask 17408  }
   0x9   :  { %v5181_v1 = vsel %vm36_vm2, 0.0, %v5002_v63  ;;  %vm3873_vm11 = vcmask 1042432   ;;  %vm3869_vm12 = vcmask 547840   ;;  %vm4132_vm13 = vcmask 1041408  }
   0xa   :  { %vm4141_vm14 = vcmask 1024  }
  0x90   :  { %v44_v2 = vpop.xlane.xlu0 %43 }
  0x91   :  { %v46_v3 = vmul.f32 0.0625, %v44_v2 }
  0x93   :  { %v47_v4 = vsub.f32 %v5051_v0, %v46_v3 }
  0x95   :  { %v48_v5 = vmul.f32 %v47_v4, %v47_v4 }
  0x97   :  { %v49_v6 = vsel %vm41_vm0, %v48_v5, 0.0 }
  0x98   :  { %50 = vadd.xlane.f32.xlu0 %v49_v6 }
 0x125   :  { %v51_v15 = vpop.xlane.xlu0 %50 }
 0x126   :  { %v52_v16 = vmul.f32 0.0625, %v51_v15 }
 0x128   :  { %v53_v18 = vadd.f32 1e-05, %v52_v16 }
 0x12a   :  { %4918 = vrsqrt.f32 %v53_v18 }
 0x134   :  { %v4919_v24 = vpop.eup %4918 }
 0x135   :  { %v55_v25 = vmul.f32 %v4919_v24, %v47_v4 }
 0x137   :  { %v60_v29 = vmul.f32 %v59_v23, %v55_v25 }
 0x139   :  { %v65_v31 = vadd.f32 %v64_v26, %v60_v29 }
 0x13b   :  { %4147 = vmatmul.mubr.msk.f32.vlgmr.msra.gmra.mrb[0].mxu1 %vm41_vm0, %v65_v31 }
 0x13c   :  { %4709 = vmatpush3.bf16.msra.mxu1 %v4708_v30  ;;  %4411 = vmatprep.mubr.msk.f32.mxu1 %vm4994_vm1, %v4992_v10 }
 0x13d   :  { %4419 = vmatprep.subr.mxu1 %v4992_v10 }
 0x13f   :  { %4412 = vmatmul.mubr.msk.f32.vlgmr.msra.gmra.mrb[2].mxu1 %vm41_vm0, %v65_v31 }
 0x140   :  { %4421 = vmatprep.mubr.msk.f32.mxu1 %vm4994_vm1, %v4992_v10 }
 0x20e   :  { %v153_v36 = vpop.f32.mrb[0].mxu1 }
 0x20f   :  { %v155_v37 = vpop.f32.mrb[1].mxu1  ;;  %v154_v38 = vadd.f32 %v153_v36, %v75_v34 }
 0x210   :  { %v156_v39 = vadd.f32 %v155_v37, %v79_v35 }
 0x211   :  { %v228_v42 = vmul.f32 0.25, %v154_v38 }
 0x212   :  { %v5114_v40 = vpop.f32.mrb[2].mxu1  ;;  %247 = vrot.lane.b32.xlu0 %v156_v39, %s4995_s22  ;;  %245 = vrot.lane.b32.xlu1 %v156_v39, %s4996_s23 }
 0x213   :  { %4415 = vmatpush3.xpose.msk.msra.mxu0 %vm41_vm0, %v156_v39  ;;  %v4413_v41 = vpop.f32.mrb[3].mxu1  ;;  %v5167_v57 = vadd.f32 %v5114_v40, %v83_v55 }
 0x214   :  { %4424 = vmatprep.subr.mxu0 %v4992_v10 }
 0x216   :  { %4417 = vmatmul.mubr.msk.f32.vlgmr.msra.gmra.mrb[0].mxu0 %vm41_vm0, %v228_v42  ;;  %257 = vrot.lane.b32.xlu0 %v156_v39, %s4997_s24 }
 0x217   :  { %249 = vrot.lane.b32.xlu1 %v156_v39, %s4998_s25  ;;  %4426 = vmatprep.mubr.msk.f32.mxu0 %vm4994_vm1, %v4992_v10 }
 0x21a   :  { %238 = vrot.lane.b32.xlu0 %v228_v42, %s4999_s26 }
 0x21b   :  { %251 = vrot.lane.b32.xlu1 %v156_v39, %s5000_s27 }
 0x21e   :  { %242 = vrot.lane.b32.xlu0 %v228_v42, %s4997_s24 }
 0x21f   :  { %253 = vrot.lane.b32.xlu1 %v156_v39, %s4999_s26 }
 0x223   :  { %255 = vrot.lane.b32.xlu1 %v156_v39, %s5001_s28 }
 0x227   :  { %230 = vrot.lane.b32.xlu1 %v228_v42, %s4996_s23 }
 0x22b   :  { %232 = vrot.lane.b32.xlu1 %v228_v42, %s4995_s22 }
 0x22f   :  { %234 = vrot.lane.b32.xlu1 %v228_v42, %s4998_s25 }
 0x233   :  { %236 = vrot.lane.b32.xlu1 %v228_v42, %s5000_s27 }
 0x237   :  { %240 = vrot.lane.b32.xlu1 %v228_v42, %s5001_s28 }
 0x284   :  { %v248_v43 = vpop.permute.xlu0 %247  ;;  %v246_v44 = vpop.permute.xlu1 %245 }
 0x285   :  { %4420 = vmatpush3.xpose.msk.msra.mxu1 %vm41_vm0, %v246_v44  ;;  %4425 = vmatpush3.xpose.msk.msra.mxu0 %vm41_vm0, %v248_v43 }
 0x286   :  { %4429 = vmatprep.subr.mxu1 %v4992_v10  ;;  %4434 = vmatprep.subr.mxu0 %v4992_v10 }
 0x288   :  { %v258_v50 = vpop.permute.xlu0 %257 }
 0x289   :  { %v250_v45 = vpop.permute.xlu1 %249 }
 0x28c   :  { %v239_v54 = vpop.permute.xlu0 %238 }
 0x28d   :  { %v252_v46 = vpop.permute.xlu1 %251 }
 0x290   :  { %v243_v58 = vpop.permute.xlu0 %242 }
 0x291   :  { %v254_v47 = vpop.permute.xlu1 %253 }
 0x295   :  { %v256_v48 = vpop.permute.xlu1 %255 }
 0x299   :  { %v231_v49 = vpop.permute.xlu1 %230 }
 0x29a   :  { %4422 = vmatmul.mubr.msk.f32.vlgmr.msra.gmra.mrb[4].mxu1 %vm41_vm0, %v231_v49 }
 0x29b   :  { %4430 = vmatpush3.xpose.msk.msra.mxu1 %vm41_vm0, %v250_v45  ;;  %4431 = vmatprep.mubr.msk.f32.mxu1 %vm4994_vm1, %v4992_v10 }
 0x29c   :  { %4439 = vmatprep.subr.mxu1 %v4992_v10 }
 0x29d   :  { %v233_v51 = vpop.permute.xlu1 %232 }
 0x29e   :  { %4427 = vmatmul.mubr.msk.f32.vlgmr.msra.gmra.mrb[2].mxu0 %vm41_vm0, %v233_v51 }
 0x29f   :  { %4435 = vmatpush3.xpose.msk.msra.mxu0 %vm41_vm0, %v252_v46  ;;  %4436 = vmatprep.mubr.msk.f32.mxu0 %vm4994_vm1, %v4992_v10 }
 0x2a0   :  { %4444 = vmatprep.subr.mxu0 %v4992_v10 }
 0x2a1   :  { %v235_v52 = vpop.permute.xlu1 %234 }
 0x2a2   :  { %4432 = vmatmul.mubr.msk.f32.vlgmr.msra.gmra.mrb[6].mxu1 %vm41_vm0, %v235_v52 }
 0x2a3   :  { %4440 = vmatpush3.xpose.msk.msra.mxu1 %vm41_vm0, %v254_v47  ;;  %4441 = vmatprep.mubr.msk.f32.mxu1 %vm4994_vm1, %v4992_v10 }
 0x2a4   :  { %4449 = vmatprep.subr.mxu1 %v4992_v10 }
 0x2a5   :  { %v237_v56 = vpop.permute.xlu1 %236 }
 0x2a6   :  { %4437 = vmatmul.mubr.msk.f32.vlgmr.msra.gmra.mrb[4].mxu0 %vm41_vm0, %v237_v56  ;;  %4442 = vmatmul.mubr.msk.f32.vlgmr.msra.gmra.mrb[8].mxu1 %vm41_vm0, %v239_v54 }
 0x2a7   :  { %4445 = vmatpush3.xpose.msk.msra.mxu0 %vm41_vm0, %v256_v48  ;;  %4450 = vmatpush3.xpose.msk.msra.mxu1 %vm41_vm0, %v258_v50 }
 0x2a8   :  { %4451 = vmatprep.mubr.msk.f32.mxu1 %vm4994_vm1, %v4992_v10  ;;  %4446 = vmatprep.mubr.msk.f32.mxu0 %vm4994_vm1, %v4992_v10 }
 0x2a9   :  { %v241_v59 = vpop.permute.xlu1 %240  ;;  %4454 = vmatprep.subr.mxu0 %v4992_v10  ;;  %4459 = vmatprep.subr.mxu1 %v4992_v10 }
 0x2aa   :  { %4447 = vmatmul.mubr.msk.f32.vlgmr.msra.gmra.mrb[6].mxu0 %vm41_vm0, %v241_v59  ;;  %4452 = vmatmul.mubr.msk.f32.vlgmr.msra.gmra.mrb[10].mxu1 %vm41_vm0, %v243_v58 }
 0x2ab   :  { %4455 = vmatpush3.msra.mxu0 %v5167_v57  ;;  %4456 = vmatprep.mubr.msk.f32.mxu0 %vm4994_vm1, %v4992_v10 }
 0x2ac   :  { %4464 = vmatprep.subr.mxu0 %v4992_v10  ;;  %4461 = vmatprep.mubr.msk.f32.mxu1 %vm4994_vm1, %v4992_v10 }
 0x2e9   :  { %v351_v2 = vpop.f32.mrb[0].mxu0 }
 0x2ea   :  { %v352_v3 = vadd.f32 %v351_v2, %v5181_v1  ;;  %v4418_v4 = vpop.f32.mrb[1].mxu0 }
 0x2ec   :  { %v874_v5 = vsel %vm873_vm3, %v352_v3, -inf }
 0x2ed   :  { %875 = vmax.xlane.f32.xlu1 %v874_v5 }
 0x36d   :  { %v425_v6 = vpop.f32.mrb[4].mxu1 }
 0x36e   :  { %v426_v7 = vadd.f32 %v425_v6, %v5181_v1  ;;  %v4423_v8 = vpop.f32.mrb[5].mxu1 }
 0x370   :  { %v877_v9 = vsel %vm873_vm3, %v426_v7, -inf }
 0x371   :  { %878 = vmax.xlane.f32.xlu0 %v877_v9  ;;  %v499_v11 = vpop.f32.mrb[2].mxu0 }
 0x372   :  { %v500_v12 = vadd.f32 %v499_v11, %v5181_v1  ;;  %v4428_v13 = vpop.f32.mrb[3].mxu0 }
 0x374   :  { %v880_v15 = vsel %vm873_vm3, %v500_v12, -inf }
 0x375   :  { %v573_v16 = vpop.f32.mrb[6].mxu1  ;;  %881 = vmax.xlane.f32.xlu0 %v880_v15 }
 0x376   :  { %v574_v17 = vadd.f32 %v573_v16, %v5181_v1  ;;  %v4433_v18 = vpop.f32.mrb[7].mxu1 }
 0x378   :  { %v883_v23 = vsel %vm873_vm3, %v574_v17, -inf }
 0x379   :  { %v721_v24 = vpop.f32.mrb[8].mxu1  ;;  %884 = vmax.xlane.f32.xlu1 %v883_v23  ;;  %v647_v25 = vpop.f32.mrb[4].mxu0 }
 0x37a   :  { %v722_v26 = vadd.f32 %v721_v24, %v5181_v1  ;;  %v648_v27 = vadd.f32 %v647_v25, %v5181_v1  ;;  %v4443_v28 = vpop.f32.mrb[9].mxu1  ;;  %v4438_v29 = vpop.f32.mrb[5].mxu0 }
 0x37b   :  { %v876_v41 = vpop.xlane.xlu1 %875 }
 0x37c   :  { %v889_v30 = vsel %vm873_vm3, %v722_v26, -inf  ;;  %v886_v31 = vsel %vm873_vm3, %v648_v27, -inf  ;;  %v898_v42 = vsub.f32 %v352_v3, %v876_v41 }
 0x37d   :  { %v869_v33 = vpop.f32.mrb[10].mxu1  ;;  %890 = vmax.xlane.f32.xlu1 %v889_v30  ;;  %887 = vmax.xlane.f32.xlu0 %v886_v31  ;;  %v795_v34 = vpop.f32.mrb[6].mxu0 }
 0x37e   :  { %v870_v35 = vadd.f32 %v869_v33, %v5181_v1  ;;  %v796_v36 = vadd.f32 %v795_v34, %v5181_v1  ;;  %v4448_v37 = vpop.f32.mrb[7].mxu0  ;;  %v4453_v38 = vpop.f32.mrb[11].mxu1  ;;  %v906_v43 = vmul.f32 1.442695, %v898_v42 }
 0x380   :  { %v895_v39 = vsel %vm873_vm3, %v870_v35, -inf  ;;  %v892_v40 = vsel %vm873_vm3, %v796_v36, -inf  ;;  %4920 = vpow2.f32 %v906_v43 }
 0x381   :  { %896 = vmax.xlane.f32.xlu1 %v895_v39  ;;  %893 = vmax.xlane.f32.xlu0 %v892_v40 }
 0x38a   :  { %v4921_v44 = vpop.eup %4920 }
 0x38b   :  { %v922_v45 = vsel %vm873_vm3, %v4921_v44, 0.0 }
 0x392   :  { %263 = vrot.lane.b32.xlu1 %v5167_v57, %s4995_s22 }
 0x396   :  { %266 = vrot.lane.b32.xlu1 %v5167_v57, %s4998_s25 }
 0x397   :  { %260 = vrot.lane.b32.xlu0 %v5167_v57, %s4996_s23 }
 0x39a   :  { %272 = vrot.lane.b32.xlu1 %v5167_v57, %s4999_s26 }
 0x39b   :  { %269 = vrot.lane.b32.xlu0 %v5167_v57, %s5000_s27 }
 0x3ba   :  { %923 = vadd.xlane.f32.xlu0 %v922_v45 }
 0x3fe   :  { %v879_v46 = vpop.xlane.xlu0 %878 }
 0x3ff   :  { %v899_v47 = vsub.f32 %v426_v7, %v879_v46 }
 0x401   :  { %v908_v48 = vmul.f32 1.442695, %v899_v47 }
 0x402   :  { %v882_v49 = vpop.xlane.xlu0 %881 }
 0x403   :  { %4922 = vpow2.f32 %v908_v48  ;;  %v900_v50 = vsub.f32 %v500_v12, %v882_v49 }
 0x405   :  { %v910_v51 = vmul.f32 1.442695, %v900_v50 }
 0x406   :  { %v885_v52 = vpop.xlane.xlu1 %884 }
 0x407   :  { %4924 = vpow2.f32 %v910_v51  ;;  %v901_v53 = vsub.f32 %v574_v17, %v885_v52 }
 0x409   :  { %v912_v54 = vmul.f32 1.442695, %v901_v53 }
 0x40a   :  { %v891_v55 = vpop.xlane.xlu1 %890  ;;  %v888_v56 = vpop.xlane.xlu0 %887 }
 0x40b   :  { %4926 = vpow2.f32 %v912_v54  ;;  %v903_v58 = vsub.f32 %v722_v26, %v891_v55  ;;  %v902_v59 = vsub.f32 %v648_v27, %v888_v56 }
 0x40d   :  { %v4923_v60 = vpop.eup %4922  ;;  %v916_v61 = vmul.f32 1.442695, %v903_v58  ;;  %v914_v62 = vmul.f32 1.442695, %v902_v59  ;;  %v1587_v58 = vld [vmem:[%s6109_s3] sm:$0xff]  ;;  %v1588_v59 = vld [vmem:[%s6109_s3 + $0x8] sm:$0xff] }
 0x40e   :  { %v897_v63 = vpop.xlane.xlu1 %896  ;;  %v894_v2 = vpop.xlane.xlu0 %893  ;;  %v925_v3 = vsel %vm873_vm3, %v4923_v60, 0.0 }
 0x40f   :  { %4928 = vpow2.f32 %v916_v61  ;;  %v905_v4 = vsub.f32 %v870_v35, %v897_v63  ;;  %v904_v5 = vsub.f32 %v796_v36, %v894_v2  ;;  %926 = vadd.xlane.f32.xlu1 %v925_v3  ;;  %v4711_v61 = vpack.c.bf16 %v1588_v59, %v1587_v58  ;;  %v1591_v2 = vld [vmem:[%s6109_s3 + $0x20] sm:$0xff]  ;;  %v1592_v3 = vld [vmem:[%s6109_s3 + $0x28] sm:$0xff] }
 0x410   :  { %4930 = vpow2.f32 %v914_v62  ;;  %v1590_v62 = vld [vmem:[%s6109_s3 + $0x18] sm:$0xff] }
 0x411   :  { %v4925_v6 = vpop.eup %4924  ;;  %v920_v7 = vmul.f32 1.442695, %v905_v4  ;;  %v918_v8 = vmul.f32 1.442695, %v904_v5  ;;  %v4717_v4 = vpack.c.bf16 %v1592_v3, %v1591_v2  ;;  %v1593_v5 = vld [vmem:[%s6109_s3 + $0x30] sm:$0xff] }
 0x412   :  { %v261_v9 = vpop.permute.xlu0 %260  ;;  %v928_v11 = vsel %vm873_vm3, %v4925_v6, 0.0  ;;  %v264_v31 = vpop.permute.xlu1 %263 }
 0x413   :  { %4932 = vpow2.f32 %v920_v7  ;;  %929 = vadd.xlane.f32.xlu0 %v928_v11  ;;  %4460 = vmatpush3.msra.mxu1 %v261_v9  ;;  %v1595_v11 = vld [vmem:[%s6109_s3 + $0x40] sm:$0xff] }
 0x414   :  { %4934 = vpow2.f32 %v918_v8  ;;  %4469 = vmatprep.subr.mxu1 %v4992_v10 }
 0x415   :  { %v4927_v12 = vpop.eup %4926 }
 0x416   :  { %v931_v13 = vsel %vm873_vm3, %v4927_v12, 0.0  ;;  %v270_v27 = vpop.permute.xlu0 %269  ;;  %v267_v33 = vpop.permute.xlu1 %266 }
 0x417   :  { %932 = vadd.xlane.f32.xlu1 %v931_v13 }
 0x419   :  { %v4929_v15 = vpop.eup %4928 }
 0x41a   :  { %v4931_v16 = vpop.eup %4930  ;;  %v937_v17 = vsel %vm873_vm3, %v4929_v15, 0.0  ;;  %v273_v34 = vpop.permute.xlu1 %272 }
 0x41b   :  { %938 = vadd.xlane.f32.xlu1 %v937_v17  ;;  %v934_v18 = vsel %vm873_vm3, %v4931_v16, 0.0 }
 0x41c   :  { %935 = vadd.xlane.f32.xlu0 %v934_v18  ;;  %v1599_v18 = vld [vmem:[%s6109_s3 + $0x60] sm:$0xff] }
 0x41d   :  { %v5216_v23 = vpop.eup %4932 }
 0x41e   :  { %v5218_v24 = vpop.eup %4934  ;;  %v943_v25 = vsel %vm873_vm3, %v5216_v23, 0.0 }
 0x41f   :  { %944 = vadd.xlane.f32.xlu1 %v943_v25  ;;  %v940_v26 = vsel %vm873_vm3, %v5218_v24, 0.0 }
 0x420   :  { %941 = vadd.xlane.f32.xlu0 %v940_v26 }
 0x430   :  { %278 = vrot.lane.b32.xlu1 %v5167_v57, %s4997_s24 }
 0x436   :  { %275 = vrot.lane.b32.xlu0 %v5167_v57, %s5001_s28 }
 0x447   :  { %v924_v28 = vpop.xlane.xlu0 %923 }
 0x448   :  { %4936 = vrcp.f32 %v924_v28  ;;  %v1602_v28 = vld [vmem:[%s6109_s3 + $0x78] sm:$0xff] }
 0x452   :  { %v4937_v29 = vpop.eup %4936 }
 0x453   :  { %v954_v30 = vmul.f32 %v4937_v29, %v4921_v44 }
 0x455   :  { %4457 = vmatmul.mubr.msk.f32.vlgmr.msra.gmra.mrb[8].mxu0 %vm873_vm3, %v954_v30 }
 0x456   :  { %4465 = vmatpush3.msra.mxu0 %v264_v31  ;;  %4466 = vmatprep.mubr.msk.f32.mxu0 %vm4994_vm1, %v4992_v10 }
 0x457   :  { %4474 = vmatprep.subr.mxu0 %v4992_v10 }
 0x49c   :  { %v927_v35 = vpop.xlane.xlu1 %926 }
 0x49d   :  { %4938 = vrcp.f32 %v927_v35 }
 0x4a0   :  { %v930_v36 = vpop.xlane.xlu0 %929 }
 0x4a1   :  { %4940 = vrcp.f32 %v930_v36 }
 0x4a4   :  { %v933_v57 = vpop.xlane.xlu1 %932 }
 0x4a5   :  { %4942 = vrcp.f32 %v933_v57 }
 0x4a7   :  { %v4939_v37 = vpop.eup %4938 }
 0x4a8   :  { %v955_v38 = vmul.f32 %v4939_v37, %v4923_v60  ;;  %v939_v39 = vpop.xlane.xlu1 %938  ;;  %v1589_v60 = vld [vmem:[%s6109_s3 + $0x10] sm:$0xff] }
 0x4a9   :  { %4944 = vrcp.f32 %v939_v39  ;;  %v936_v40 = vpop.xlane.xlu0 %935  ;;  %v4714_v63 = vpack.c.bf16 %v1590_v62, %v1589_v60 }
 0x4aa   :  { %4946 = vrcp.f32 %v936_v40  ;;  %4462 = vmatmul.mubr.msk.f32.vlgmr.msra.gmra.mrb[12].mxu1 %vm873_vm3, %v955_v38 }
 0x4ab   :  { %v4941_v41 = vpop.eup %4940  ;;  %4470 = vmatpush3.msra.mxu1 %v267_v33  ;;  %4471 = vmatprep.mubr.msk.f32.mxu1 %vm4994_vm1, %v4992_v10 }
 0x4ac   :  { %v956_v42 = vmul.f32 %v4941_v41, %v4925_v6  ;;  %v945_v43 = vpop.xlane.xlu1 %944  ;;  %4479 = vmatprep.subr.mxu1 %v4992_v10  ;;  %v1594_v6 = vld [vmem:[%s6109_s3 + $0x38] sm:$0xff] }
 0x4ad   :  { %4948 = vrcp.f32 %v945_v43  ;;  %v942_v44 = vpop.xlane.xlu0 %941  ;;  %v4720_v7 = vpack.c.bf16 %v1594_v6, %v1593_v5 }
 0x4ae   :  { %4950 = vrcp.f32 %v942_v44  ;;  %4467 = vmatmul.mubr.msk.f32.vlgmr.msra.gmra.mrb[10].mxu0 %vm873_vm3, %v956_v42 }
 0x4af   :  { %v4943_v45 = vpop.eup %4942  ;;  %4475 = vmatpush3.msra.mxu0 %v270_v27  ;;  %4476 = vmatprep.mubr.msk.f32.mxu0 %vm4994_vm1, %v4992_v10  ;;  %v1601_v27 = vld [vmem:[%s6109_s3 + $0x70] sm:$0xff] }
 0x4b0   :  { %v957_v46 = vmul.f32 %v4943_v45, %v4927_v12  ;;  %4484 = vmatprep.subr.mxu0 %v4992_v10  ;;  %v279_v51 = vpop.permute.xlu1 %278  ;;  %v1596_v12 = vld [vmem:[%s6109_s3 + $0x48] sm:$0xff]  ;;  %v4732_v29 = vpack.c.bf16 %v1602_v28, %v1601_v27  ;;  %v1694_v27 = vsub.s32 4, %v5075_v19  ;;  %v1699_v28 = vsub.s32 5, %v5075_v19 }
 0x4b1   :  { %v276_v53 = vpop.permute.xlu0 %275  ;;  %v4723_v13 = vpack.c.bf16 %v1596_v12, %v1595_v11  ;;  %v1783_v11 = vld [vmem:[%s6111_s5 + $0x8] sm:$0xff]  ;;  %v1784_v12 = vld [vmem:[%s6111_s5 + $0x10] sm:$0xff] }
 0x4b2   :  { %4472 = vmatmul.mubr.msk.f32.vlgmr.msra.gmra.mrb[14].mxu1 %vm873_vm3, %v957_v46 }
 0x4b3   :  { %v4945_v47 = vpop.eup %4944  ;;  %4480 = vmatpush3.msra.mxu1 %v273_v34  ;;  %4481 = vmatprep.mubr.msk.f32.mxu1 %vm4994_vm1, %v4992_v10 }
 0x4b4   :  { %v4947_v48 = vpop.eup %4946  ;;  %v959_v49 = vmul.f32 %v4945_v47, %v4929_v15  ;;  %4489 = vmatprep.subr.mxu1 %v4992_v10  ;;  %v1597_v15 = vld [vmem:[%s6109_s3 + $0x50] sm:$0xff] }
 0x4b5   :  { %v958_v50 = vmul.f32 %v4947_v48, %v4931_v16  ;;  %v1598_v16 = vld [vmem:[%s6109_s3 + $0x58] sm:$0xff] }
 0x4b6   :  { %4482 = vmatmul.mubr.msk.f32.vlgmr.msra.gmra.mrb[16].mxu1 %vm873_vm3, %v959_v49  ;;  %v4726_v17 = vpack.c.bf16 %v1598_v16, %v1597_v15  ;;  %v1785_v15 = vld [vmem:[%s6111_s5 + $0x18] sm:$0xff] }
 0x4b7   :  { %v4949_v52 = vpop.eup %4948  ;;  %4477 = vmatmul.mubr.msk.f32.vlgmr.msra.gmra.mrb[12].mxu0 %vm873_vm3, %v958_v50  ;;  %4490 = vmatpush3.msra.mxu1 %v279_v51  ;;  %v4741_v16 = vpack.c.bf16 %v1785_v15, %v1784_v12  ;;  %v4176_v15 = vld [vmem:[%s6108_s6 + $0x20] sm:$0xff] }
 0x4b8   :  { %v4951_v54 = vpop.eup %4950  ;;  %v961_v55 = vmul.f32 %v4949_v52, %v5216_v23  ;;  %4485 = vmatpush3.msra.mxu0 %v276_v53  ;;  %4486 = vmatprep.mubr.msk.f32.mxu0 %vm4994_vm1, %v4992_v10  ;;  %v1600_v23 = vld [vmem:[%s6109_s3 + $0x68] sm:$0xff] }
 0x4b9   :  { %v960_v56 = vmul.f32 %v4951_v54, %v5218_v24  ;;  %4491 = vmatprep.mubr.msk.f32.mxu1 %vm4994_vm1, %v4992_v10  ;;  %4710 = vmatprep.subr.bf16.mxu0 %v4993_v14  ;;  %v4729_v24 = vpack.c.bf16 %v1600_v23, %v1599_v18  ;;  %v1787_v18 = vld [vmem:[%s6111_s5 + $0x28] sm:$0xff] }
 0x4ba   :  { %4492 = vmatmul.mubr.msk.f32.vlgmr.msra.gmra.mrb[18].mxu1 %vm873_vm3, %v961_v55  ;;  %4734 = vmatprep.subr.bf16.mxu1 %v4993_v14 }
 0x4bb   :  { %4487 = vmatmul.mubr.msk.f32.vlgmr.msra.gmra.mrb[14].mxu0 %vm873_vm3, %v960_v56  ;;  %4533 = vmatprep.mubr.msk.f32.mxu1 %vm4994_vm1, %v4992_v10  ;;  %v1676_v56 = vsub.s32 3, %v5075_v19 }
 0x4bc   :  { %4526 = vmatprep.mubr.msk.f32.mxu0 %vm4994_vm1, %v4992_v10  ;;  %4712 = vmatpush3.bf16.msra.mxu0 %v4711_v61 }
 0x4bd   :  { %4713 = vmatprep.subr.bf16.mxu0 %v4993_v14  ;;  %v1677_v58 = vrot.slane %v5083_v21, %v1676_v56 }
 0x4c0   :  { %4715 = vmatpush3.bf16.msra.mxu0 %v4714_v63 }
 0x4c1   :  { %4716 = vmatprep.subr.bf16.mxu0 %v4993_v14 }
 0x4c4   :  { %4718 = vmatpush3.bf16.msra.mxu0 %v4717_v4 }
 0x4c5   :  { %4719 = vmatprep.subr.bf16.mxu0 %v4993_v14 }
 0x4c8   :  { %4721 = vmatpush3.bf16.msra.mxu0 %v4720_v7  ;;  %v1702_v7 = vld [vmem:[%s6110_s4] sm:$0xff] }
 0x4c9   :  { %4722 = vmatprep.subr.bf16.mxu0 %v4993_v14 }
 0x4cc   :  { %4724 = vmatpush3.bf16.msra.mxu0 %v4723_v13 }
 0x4cd   :  { %4725 = vmatprep.subr.bf16.mxu0 %v4993_v14 }
 0x4d0   :  { %4727 = vmatpush3.bf16.msra.mxu0 %v4726_v17  ;;  %v1786_v17 = vld [vmem:[%s6111_s5 + $0x20] sm:$0xff] }
 0x4d1   :  { %4728 = vmatprep.subr.bf16.mxu0 %v4993_v14  ;;  %v4744_v23 = vpack.c.bf16 %v1787_v18, %v1786_v17  ;;  %v1910_v17 = vrot.slane %v4176_v15, %v5106_v32 }
 0x4d4   :  { %4730 = vmatpush3.bf16.msra.mxu0 %v4729_v24 }
 0x4d5   :  { %4731 = vmatprep.subr.bf16.mxu0 %v4993_v14 }
 0x4d8   :  { %4733 = vmatpush3.bf16.msra.mxu0 %v4732_v29  ;;  %v1695_v29 = vrot.slane %v5083_v21, %v1694_v27 }
 0x4d9   :  { %4737 = vmatprep.subr.bf16.mxu0 %v4993_v14 }
 0x528   :  { %v1031_v8 = vpop.f32.mrb[8].mxu0 }
 0x529   :  { %v4458_v9 = vpop.f32.mrb[9].mxu0 }
 0x52a   :  { %v1782_v9 = vld [vmem:[%s6111_s5] sm:$0xff] }
 0x52b   :  { %v4738_v13 = vpack.c.bf16 %v1783_v11, %v1782_v9  ;;  %v4183_v9 = vld [vmem:[%s6107_s2 + $0x58] sm:$0xff] }
 0x57d   :  { %v1104_v25 = vpop.f32.mrb[12].mxu1 }
 0x57e   :  { %1547 = vrot.lane.b32.xlu0 %v1104_v25, %s4997_s24  ;;  %v4463_v26 = vpop.f32.mrb[13].mxu1 }
 0x581   :  { %v1177_v30 = vpop.f32.mrb[10].mxu0 }
 0x582   :  { %1551 = vrot.lane.b32.xlu1 %v1177_v30, %s5001_s28  ;;  %v4468_v31 = vpop.f32.mrb[11].mxu0 }
 0x585   :  { %v1250_v33 = vpop.f32.mrb[14].mxu1 }
 0x586   :  { %1555 = vrot.lane.b32.xlu0 %v1250_v33, %s4999_s26  ;;  %v4473_v34 = vpop.f32.mrb[15].mxu1  ;;  %v1700_v33 = vrot.slane %v5083_v21, %v1699_v28 }
 0x589   :  { %v1396_v35 = vpop.f32.mrb[16].mxu1 }
 0x58a   :  { %v1323_v36 = vpop.f32.mrb[12].mxu0  ;;  %1563 = vrot.lane.b32.xlu0 %v1396_v35, %s4998_s25  ;;  %v4483_v57 = vpop.f32.mrb[17].mxu1 }
 0x58b   :  { %1559 = vrot.lane.b32.xlu1 %v1323_v36, %s5000_s27  ;;  %v4478_v37 = vpop.f32.mrb[13].mxu0  ;;  %v1788_v36 = vld [vmem:[%s6111_s5 + $0x30] sm:$0xff]  ;;  %v1789_v57 = vld [vmem:[%s6111_s5 + $0x38] sm:$0xff] }
 0x58c   :  { %v4747_v37 = vpack.c.bf16 %v1789_v57, %v1788_v36 }
 0x58d   :  { %v1542_v38 = vpop.f32.mrb[18].mxu1 }
 0x58e   :  { %v1469_v39 = vpop.f32.mrb[14].mxu0  ;;  %1571 = vrot.lane.b32.xlu0 %v1542_v38, %s4996_s23  ;;  %v4493_v40 = vpop.f32.mrb[19].mxu1  ;;  %v1706_v38 = vsub.s32 6, %v5075_v19 }
 0x58f   :  { %1567 = vrot.lane.b32.xlu1 %v1469_v39, %s4995_s22  ;;  %v4488_v41 = vpop.f32.mrb[15].mxu0 }
 0x590   :  { %v1707_v39 = vrot.slane %v5083_v21, %v1706_v38 }
 0x5f0   :  { %v1548_v42 = vpop.permute.xlu0 %1547 }
 0x5f1   :  { %v1574_v45 = vsel %vm41_vm0, %v1031_v8, %v1548_v42 }
 0x5f4   :  { %v1552_v44 = vpop.permute.xlu1 %1551 }
 0x5f5   :  { %v1576_v46 = vsel %vm1575_vm4, %v1574_v45, %v1552_v44  ;;  %v1866_v44 = vsub.s32 7, %v5075_v19  ;;  %v3724_v19 = vld [vmem:[%s6113_s7 + $0xf8] sm:$0xff] }
 0x5f7   :  { %v1867_v45 = vrot.slane %v5083_v21, %v1866_v44  ;;  %v4179_v21 = vld [vmem:[%s6107_s2 + $0x38] sm:$0xff] }
 0x5f8   :  { %v1556_v43 = vpop.permute.xlu0 %1555 }
 0x5f9   :  { %v1578_v48 = vsel %vm1577_vm5, %v1576_v46, %v1556_v43 }
 0x5fc   :  { %v1564_v47 = vpop.permute.xlu0 %1563 }
 0x5fd   :  { %v1560_v49 = vpop.permute.xlu1 %1559 }
 0x5fe   :  { %v1580_v50 = vsel %vm1579_vm6, %v1578_v48, %v1560_v49 }
 0x5ff   :  { %v1582_v52 = vsel %vm1581_vm7, %v1580_v50, %v1564_v47 }
 0x600   :  { %v1572_v51 = vpop.permute.xlu0 %1571 }
 0x601   :  { %v1568_v53 = vpop.permute.xlu1 %1567 }
 0x602   :  { %v1584_v54 = vsel %vm1583_vm8, %v1582_v52, %v1568_v53 }
 0x603   :  { %v1586_v55 = vsel %vm1585_vm9, %v1584_v54, %v1572_v51 }
 0x604   :  { %4527 = vmatmul.mubr.f32.vlgmr.msra.gmra.mrb[16].mxu0 %v1586_v55 }
 0x605   :  { %4552 = vmatprep.mubr.msk.f32.mxu0 %vm4994_vm1, %v4992_v10  ;;  %4739 = vmatpush3.bf16.msra.mxu0 %v4738_v13 }
 0x606   :  { %4740 = vmatprep.subr.bf16.mxu0 %v4993_v14 }
 0x609   :  { %4742 = vmatpush3.bf16.msra.mxu0 %v4741_v16 }
 0x60a   :  { %4743 = vmatprep.subr.bf16.mxu0 %v4993_v14 }
 0x60d   :  { %4745 = vmatpush3.bf16.msra.mxu0 %v4744_v23 }
 0x60e   :  { %4746 = vmatprep.subr.bf16.mxu0 %v4993_v14 }
 0x611   :  { %4748 = vmatpush3.bf16.msra.mxu0 %v4747_v37 }
 0x612   :  { %4567 = vmatprep.subr.mxu0 %v4992_v10 }
 0x6d7   :  { %v1669_v59 = vpop.f32.mrb[16].mxu0 }
 0x6d8   :  { %v1673_v60 = vadd.f32 %v1669_v59, %v5051_v0  ;;  %v4528_v61 = vpop.f32.mrb[17].mxu0  ;;  %v1703_v0 = vld [vmem:[%s6110_s4 + $0x8] sm:$0xff]  ;;  %v4178_v59 = vld [vmem:[%s6107_s2 + $0x30] sm:$0xff] }
 0x6d9   :  { %v4735_v8 = vpack.c.bf16 %v1703_v0, %v1702_v7  ;;  %v4181_v61 = vld [vmem:[%s6107_s2 + $0x48] sm:$0xff] }
 0x6da   :  { %v1678_v62 = vadd.f32 %v1677_v58, %v1673_v60  ;;  %v4182_v58 = vld [vmem:[%s6107_s2 + $0x50] sm:$0xff] }
 0x6db   :  { %4736 = vmatpush3.bf16.msra.mxu1 %v4735_v8  ;;  %v4749_v60 = vpack.c.bf16 %v4182_v58, %v4179_v21  ;;  %v4180_v8 = vld [vmem:[%s6107_s2 + $0x40] sm:$0xff] }
 0x6dc   :  { %v1679_v63 = vsel %vm41_vm0, %v1678_v62, 0.0  ;;  %v4754_v12 = vpack.c.bf16 %v4183_v9, %v4180_v8 }
 0x6dd   :  { %1680 = vadd.xlane.f32.xlu1 %v1679_v63  ;;  %4750 = vmatprep.subr.bf16.mxu1 %v4749_v60 }
 0x76a   :  { %v1681_v2 = vpop.xlane.xlu1 %1680 }
 0x76b   :  { %v1682_v3 = vmul.f32 0.0625, %v1681_v2 }
 0x76d   :  { %v1683_v4 = vsub.f32 %v1678_v62, %v1682_v3 }
 0x76f   :  { %v1684_v5 = vmul.f32 %v1683_v4, %v1683_v4 }
 0x771   :  { %v1685_v6 = vsel %vm41_vm0, %v1684_v5, 0.0 }
 0x772   :  { %1686 = vadd.xlane.f32.xlu0 %v1685_v6 }
 0x7ff   :  { %v1687_v24 = vpop.xlane.xlu0 %1686 }
 0x800   :  { %v1688_v25 = vmul.f32 0.0625, %v1687_v24 }
 0x802   :  { %v1689_v26 = vadd.f32 1e-05, %v1688_v25 }
 0x804   :  { %4952 = vrsqrt.f32 %v1689_v26 }
 0x80e   :  { %v4953_v30 = vpop.eup %4952 }
 0x80f   :  { %v1691_v31 = vmul.f32 %v4953_v30, %v1683_v4  ;;  %v5416_v4 = vld [vmem:[%s6108_s6 + $0x18] sm:$0xff] }
 0x810   :  { %v1889_v5 = vrot.slane %v5416_v4, %v5078_v20  ;;  %v1894_v0 = vrot.slane %v5416_v4, %v5086_v22  ;;  %v1906_v16 = vrot.slane %v5416_v4, %v5106_v32 }
 0x811   :  { %v1696_v34 = vmul.f32 %v1695_v29, %v1691_v31 }
 0x813   :  { %v1701_v35 = vadd.f32 %v1700_v33, %v1696_v34 }
 0x815   :  { %4534 = vmatmul.mubr.msk.f32.vlgmr.msra.gmra.mrb[20].mxu1 %vm41_vm0, %v1701_v35 }
 0x816   :  { %1982 = vmatprep.mubr.f32.mxu1 %v4992_v10 }
 0x8e8   :  { %v1777_v40 = vpop.f32.mrb[20].mxu1 }
 0x8e9   :  { %v1778_v41 = vadd.f32 %v1777_v40, %v1707_v39  ;;  %v4535_v42 = vpop.f32.mrb[21].mxu1 }
 0x8eb   :  { %v1781_v43 = vmax.f32 %v1778_v41, 0.0  ;;  %v4177_v41 = vld [vmem:[%s6108_s6 + $0x28] sm:$0xff] }
 0x8ed   :  { %4553 = vmatmul.mubr.msk.f32.vlgmr.msra.gmra.mrb[18].mxu0 %vm1579_vm6, %v1781_v43  ;;  %v1914_v43 = vrot.slane %v4177_v41, %v5106_v32 }
 0x8ee   :  { %4569 = vmatprep.mubr.msk.f32.mxu0 %vm4994_vm1, %v4992_v10 }
 0x9c0   :  { %v1859_v46 = vpop.f32.mrb[18].mxu0 }
 0x9c1   :  { %v1863_v47 = vadd.f32 %v1859_v46, %v1678_v62  ;;  %v4554_v48 = vpop.f32.mrb[19].mxu0  ;;  %v4751_v62 = vpack.c.bf16 %v4181_v61, %v4178_v59 }
 0x9c3   :  { %v5394_v49 = vadd.f32 %v1867_v45, %v1863_v47  ;;  %4752 = vmatpush1.bf16.msra.mxu1 %v4751_v62 }
 0x9c4   :  { %4753 = vmatprep.subr.bf16.mxu1 %v4993_v14 }
 0x9c5   :  { %v1873_v50 = vsel %vm41_vm0, %v5394_v49, 0.0 }
 0x9c6   :  { %1874 = vadd.xlane.f32.xlu0 %v1873_v50 }
 0xa53   :  { %v1875_v51 = vpop.xlane.xlu0 %1874 }
 0xa54   :  { %v1876_v52 = vmul.f32 0.0625, %v1875_v51 }
 0xa56   :  { %v1877_v53 = vsub.f32 %v5394_v49, %v1876_v52 }
 0xa58   :  { %v1878_v54 = vmul.f32 %v1877_v53, %v1877_v53 }
 0xa5a   :  { %v1879_v55 = vsel %vm41_vm0, %v1878_v54, 0.0 }
 0xa5b   :  { %1880 = vadd.xlane.f32.xlu1 %v1879_v55 }
 0xae8   :  { %v1881_v63 = vpop.xlane.xlu1 %1880 }
 0xae9   :  { %v1882_v2 = vmul.f32 0.0625, %v1881_v63 }
 0xaeb   :  { %v1883_v3 = vadd.f32 1e-05, %v1882_v2 }
 0xaed   :  { %4954 = vrsqrt.f32 %v1883_v3 }
 0xaf7   :  { %v4955_v6 = vpop.eup %4954 }
 0xaf8   :  { %v1885_v7 = vmul.f32 %v4955_v6, %v1877_v53 }
 0xafa   :  { %v1890_v11 = vmul.f32 %v1889_v5, %v1885_v7 }
 0xafc   :  { %v1895_v13 = vadd.f32 %v1894_v0, %v1890_v11 }
 0xafe   :  { %4184 = vmatmul.mubr.msk.f32.vlgmr.msra.gmra.mrb[22].mxu1 %vm41_vm0, %v1895_v13 }
 0xaff   :  { %4755 = vmatpush3.bf16.msra.mxu1 %v4754_v12  ;;  %4559 = vmatprep.mubr.msk.f32.mxu1 %vm4994_vm1, %v4992_v10 }
 0xb00   :  { %4562 = vmatprep.subr.mxu1 %v4992_v10 }
 0xb02   :  { %4560 = vmatmul.mubr.msk.f32.vlgmr.msra.gmra.mrb[24].mxu1 %vm41_vm0, %v1895_v13 }
 0xb03   :  { %4564 = vmatprep.mubr.msk.f32.mxu1 %vm4994_vm1, %v4992_v10 }
 0xbd1   :  { %v1984_v18 = vpop.f32.mrb[22].mxu1 }
 0xbd2   :  { %v1986_v23 = vpop.f32.mrb[23].mxu1  ;;  %v1985_v24 = vadd.f32 %v1984_v18, %v1906_v16 }
 0xbd3   :  { %v1987_v25 = vadd.f32 %v1986_v23, %v1910_v17 }
 0xbd4   :  { %v2059_v30 = vmul.f32 0.25, %v1985_v24 }
 0xbd5   :  { %v2055_v26 = vpop.f32.mrb[24].mxu1  ;;  %2078 = vrot.lane.b32.xlu1 %v1987_v25, %s4995_s22  ;;  %2076 = vrot.lane.b32.xlu0 %v1987_v25, %s4996_s23 }
 0xbd6   :  { %4563 = vmatpush3.xpose.msk.msra.mxu1 %vm41_vm0, %v1987_v25  ;;  %v4561_v29 = vpop.f32.mrb[25].mxu1  ;;  %v5489_v47 = vadd.f32 %v2055_v26, %v1914_v43 }
 0xbd7   :  { %4572 = vmatprep.subr.mxu1 %v4992_v10 }
 0xbd9   :  { %4565 = vmatmul.mubr.msk.f32.vlgmr.msra.gmra.mrb[26].mxu1 %vm41_vm0, %v2059_v30  ;;  %2082 = vrot.lane.b32.xlu1 %v1987_v25, %s5000_s27 }
 0xbda   :  { %2080 = vrot.lane.b32.xlu0 %v1987_v25, %s4998_s25  ;;  %4574 = vmatprep.mubr.msk.f32.mxu1 %vm4994_vm1, %v4992_v10 }
 0xbdd   :  { %2086 = vrot.lane.b32.xlu1 %v1987_v25, %s5001_s28 }
 0xbde   :  { %2084 = vrot.lane.b32.xlu0 %v1987_v25, %s4999_s26 }
 0xbe1   :  { %2061 = vrot.lane.b32.xlu1 %v2059_v30, %s4996_s23 }
 0xbe2   :  { %2088 = vrot.lane.b32.xlu0 %v1987_v25, %s4997_s24 }
 0xbe5   :  { %2063 = vrot.lane.b32.xlu1 %v2059_v30, %s4995_s22 }
 0xbe6   :  { %2065 = vrot.lane.b32.xlu0 %v2059_v30, %s4998_s25 }
 0xbe9   :  { %2067 = vrot.lane.b32.xlu1 %v2059_v30, %s5000_s27 }
 0xbea   :  { %2069 = vrot.lane.b32.xlu0 %v2059_v30, %s4999_s26 }
 0xbed   :  { %2071 = vrot.lane.b32.xlu1 %v2059_v30, %s5001_s28 }
 0xbee   :  { %2073 = vrot.lane.b32.xlu0 %v2059_v30, %s4997_s24 }
 0xc47   :  { %v2079_v31 = vpop.permute.xlu1 %2078  ;;  %v2077_v33 = vpop.permute.xlu0 %2076 }
 0xc48   :  { %4568 = vmatpush3.xpose.msk.msra.mxu0 %vm41_vm0, %v2077_v33  ;;  %4573 = vmatpush3.xpose.msk.msra.mxu1 %vm41_vm0, %v2079_v31 }
 0xc49   :  { %4577 = vmatprep.subr.mxu0 %v4992_v10  ;;  %4582 = vmatprep.subr.mxu1 %v4992_v10 }
 0xc4b   :  { %v2083_v34 = vpop.permute.xlu1 %2082 }
 0xc4c   :  { %v2081_v35 = vpop.permute.xlu0 %2080 }
 0xc4f   :  { %v2087_v36 = vpop.permute.xlu1 %2086 }
 0xc50   :  { %v2085_v57 = vpop.permute.xlu0 %2084 }
 0xc53   :  { %v2062_v37 = vpop.permute.xlu1 %2061 }
 0xc54   :  { %v2089_v39 = vpop.permute.xlu0 %2088  ;;  %4570 = vmatmul.mubr.msk.f32.vlgmr.msra.gmra.mrb[20].mxu0 %vm41_vm0, %v2062_v37 }
 0xc55   :  { %4578 = vmatpush3.xpose.msk.msra.mxu0 %vm41_vm0, %v2081_v35  ;;  %4579 = vmatprep.mubr.msk.f32.mxu0 %vm4994_vm1, %v4992_v10 }
 0xc56   :  { %4587 = vmatprep.subr.mxu0 %v4992_v10 }
 0xc57   :  { %v2064_v40 = vpop.permute.xlu1 %2063 }
 0xc58   :  { %v2066_v42 = vpop.permute.xlu0 %2065  ;;  %4575 = vmatmul.mubr.msk.f32.vlgmr.msra.gmra.mrb[28].mxu1 %vm41_vm0, %v2064_v40 }
 0xc59   :  { %4580 = vmatmul.mubr.msk.f32.vlgmr.msra.gmra.mrb[22].mxu0 %vm41_vm0, %v2066_v42  ;;  %4583 = vmatpush3.xpose.msk.msra.mxu1 %vm41_vm0, %v2083_v34 }
 0xc5a   :  { %4588 = vmatpush3.xpose.msk.msra.mxu0 %vm41_vm0, %v2085_v57  ;;  %4589 = vmatprep.mubr.msk.f32.mxu0 %vm4994_vm1, %v4992_v10 }
 0xc5b   :  { %4597 = vmatprep.subr.mxu0 %v4992_v10  ;;  %v2068_v45 = vpop.permute.xlu1 %2067  ;;  %4584 = vmatprep.mubr.msk.f32.mxu1 %vm4994_vm1, %v4992_v10 }
 0xc5c   :  { %v2070_v46 = vpop.permute.xlu0 %2069  ;;  %4592 = vmatprep.subr.mxu1 %v4992_v10  ;;  %4585 = vmatmul.mubr.msk.f32.vlgmr.msra.gmra.mrb[30].mxu1 %vm41_vm0, %v2068_v45 }
 0xc5d   :  { %4590 = vmatmul.mubr.msk.f32.vlgmr.msra.gmra.mrb[24].mxu0 %vm41_vm0, %v2070_v46  ;;  %4593 = vmatpush3.xpose.msk.msra.mxu1 %vm41_vm0, %v2087_v36 }
 0xc5e   :  { %4598 = vmatpush3.xpose.msk.msra.mxu0 %vm41_vm0, %v2089_v39  ;;  %4599 = vmatprep.mubr.msk.f32.mxu0 %vm4994_vm1, %v4992_v10 }
 0xc5f   :  { %v2072_v48 = vpop.permute.xlu1 %2071  ;;  %4594 = vmatprep.mubr.msk.f32.mxu1 %vm4994_vm1, %v4992_v10  ;;  %4602 = vmatprep.subr.mxu1 %v4992_v10 }
 0xc60   :  { %v2074_v50 = vpop.permute.xlu0 %2073  ;;  %4595 = vmatmul.mubr.msk.f32.vlgmr.msra.gmra.mrb[32].mxu1 %vm41_vm0, %v2072_v48  ;;  %4607 = vmatprep.subr.mxu0 %v4992_v10 }
 0xc61   :  { %4600 = vmatmul.mubr.msk.f32.vlgmr.msra.gmra.mrb[26].mxu0 %vm41_vm0, %v2074_v50  ;;  %4603 = vmatpush3.msra.mxu1 %v5489_v47 }
 0xc62   :  { %4604 = vmatprep.mubr.msk.f32.mxu1 %vm4994_vm1, %v4992_v10  ;;  %4612 = vmatprep.subr.mxu1 %v4992_v10 }
 0xc63   :  { %4609 = vmatprep.mubr.msk.f32.mxu0 %vm4994_vm1, %v4992_v10 }
 0xcac   :  { %v2182_v51 = vpop.f32.mrb[26].mxu1 }
 0xcad   :  { %v2183_v52 = vadd.f32 %v2182_v51, %v5181_v1  ;;  %v4566_v53 = vpop.f32.mrb[27].mxu1 }
 0xcaf   :  { %v2704_v54 = vsel %vm873_vm3, %v2183_v52, -inf }
 0xcb0   :  { %2705 = vmax.xlane.f32.xlu1 %v2704_v54 }
 0xd27   :  { %v2256_v55 = vpop.f32.mrb[20].mxu0 }
 0xd28   :  { %v2257_v21 = vadd.f32 %v2256_v55, %v5181_v1  ;;  %v4571_v58 = vpop.f32.mrb[21].mxu0 }
 0xd2a   :  { %v2707_v59 = vsel %vm873_vm3, %v2257_v21, -inf }
 0xd2b   :  { %v2330_v60 = vpop.f32.mrb[28].mxu1  ;;  %2708 = vmax.xlane.f32.xlu0 %v2707_v59 }
 0xd2c   :  { %v2331_v61 = vadd.f32 %v2330_v60, %v5181_v1  ;;  %v2404_v62 = vpop.f32.mrb[22].mxu0  ;;  %v4576_v63 = vpop.f32.mrb[29].mxu1 }
 0xd2d   :  { %v2405_v2 = vadd.f32 %v2404_v62, %v5181_v1  ;;  %v4581_v3 = vpop.f32.mrb[23].mxu0 }
 0xd2e   :  { %v2710_v5 = vsel %vm873_vm3, %v2331_v61, -inf }
 0xd2f   :  { %v2478_v6 = vpop.f32.mrb[30].mxu1  ;;  %2711 = vmax.xlane.f32.xlu0 %v2710_v5  ;;  %v2713_v7 = vsel %vm873_vm3, %v2405_v2, -inf }
 0xd30   :  { %v2479_v0 = vadd.f32 %v2478_v6, %v5181_v1  ;;  %2714 = vmax.xlane.f32.xlu1 %v2713_v7  ;;  %v2552_v8 = vpop.f32.mrb[24].mxu0  ;;  %v4586_v9 = vpop.f32.mrb[31].mxu1 }
 0xd31   :  { %v2553_v11 = vadd.f32 %v2552_v8, %v5181_v1  ;;  %v4591_v12 = vpop.f32.mrb[25].mxu0 }
 0xd32   :  { %v2716_v13 = vsel %vm873_vm3, %v2479_v0, -inf }
 0xd33   :  { %v2626_v15 = vpop.f32.mrb[32].mxu1  ;;  %2717 = vmax.xlane.f32.xlu0 %v2716_v13  ;;  %v2719_v16 = vsel %vm873_vm3, %v2553_v11, -inf }
 0xd34   :  { %v2627_v17 = vadd.f32 %v2626_v15, %v5181_v1  ;;  %2720 = vmax.xlane.f32.xlu1 %v2719_v16  ;;  %v2700_v18 = vpop.f32.mrb[26].mxu0  ;;  %v4596_v23 = vpop.f32.mrb[33].mxu1 }
 0xd35   :  { %v2701_v24 = vadd.f32 %v2700_v18, %v5181_v1  ;;  %v4601_v25 = vpop.f32.mrb[27].mxu0 }
 0xd36   :  { %v2722_v26 = vsel %vm873_vm3, %v2627_v17, -inf }
 0xd37   :  { %2723 = vmax.xlane.f32.xlu0 %v2722_v26  ;;  %v2725_v29 = vsel %vm873_vm3, %v2701_v24, -inf }
 0xd38   :  { %2726 = vmax.xlane.f32.xlu1 %v2725_v29 }
 0xd3d   :  { %v2706_v1 = vpop.xlane.xlu1 %2705 }
 0xd3e   :  { %v2728_v30 = vsub.f32 %v2183_v52, %v2706_v1 }
 0xd40   :  { %v2736_v31 = vmul.f32 1.442695, %v2728_v30 }
 0xd42   :  { %4956 = vpow2.f32 %v2736_v31 }
 0xd49   :  { %2094 = vrot.lane.b32.xlu1 %v5489_v47, %s4995_s22 }
 0xd4c   :  { %v4957_v33 = vpop.eup %4956 }
 0xd4d   :  { %2097 = vrot.lane.b32.xlu1 %v5489_v47, %s4998_s25  ;;  %2091 = vrot.lane.b32.xlu0 %v5489_v47, %s4996_s23  ;;  %v2752_v34 = vsel %vm873_vm3, %v4957_v33, 0.0 }
 0xd51   :  { %2103 = vrot.lane.b32.xlu1 %v5489_v47, %s4999_s26  ;;  %2100 = vrot.lane.b32.xlu0 %v5489_v47, %s5000_s27 }
 0xd70   :  { %2753 = vadd.xlane.f32.xlu0 %v2752_v34 }
 0xdb8   :  { %v2709_v35 = vpop.xlane.xlu0 %2708 }
 0xdb9   :  { %v2729_v36 = vsub.f32 %v2257_v21, %v2709_v35 }
 0xdbb   :  { %v2738_v57 = vmul.f32 1.442695, %v2729_v36 }
 0xdbc   :  { %v2712_v37 = vpop.xlane.xlu0 %2711 }
 0xdbd   :  { %4958 = vpow2.f32 %v2738_v57  ;;  %v2730_v39 = vsub.f32 %v2331_v61, %v2712_v37  ;;  %v2715_v40 = vpop.xlane.xlu1 %2714 }
 0xdbe   :  { %v2731_v41 = vsub.f32 %v2405_v2, %v2715_v40 }
 0xdbf   :  { %v2740_v42 = vmul.f32 1.442695, %v2730_v39 }
 0xdc0   :  { %v2742_v43 = vmul.f32 1.442695, %v2731_v41  ;;  %v2718_v45 = vpop.xlane.xlu0 %2717 }
 0xdc1   :  { %4960 = vpow2.f32 %v2740_v42  ;;  %v2732_v46 = vsub.f32 %v2479_v0, %v2718_v45  ;;  %v2721_v48 = vpop.xlane.xlu1 %2720 }
 0xdc2   :  { %4962 = vpow2.f32 %v2742_v43  ;;  %v2733_v50 = vsub.f32 %v2553_v11, %v2721_v48 }
 0xdc3   :  { %v2744_v51 = vmul.f32 1.442695, %v2732_v46 }
 0xdc4   :  { %v2746_v52 = vmul.f32 1.442695, %v2733_v50  ;;  %v2724_v53 = vpop.xlane.xlu0 %2723 }
 0xdc5   :  { %4964 = vpow2.f32 %v2744_v51  ;;  %v2734_v54 = vsub.f32 %v2627_v17, %v2724_v53  ;;  %v2727_v55 = vpop.xlane.xlu1 %2726  ;;  %v4210_v53 = vld [vmem:[%s6109_s3 + $0x80] sm:$0xff] }
 0xdc6   :  { %4966 = vpow2.f32 %v2746_v52  ;;  %v2735_v21 = vsub.f32 %v2701_v24, %v2727_v55  ;;  %v4212_v55 = vld [vmem:[%s6109_s3 + $0x90] sm:$0xff] }
 0xdc7   :  { %v4959_v58 = vpop.eup %4958  ;;  %v2748_v59 = vmul.f32 1.442695, %v2734_v54  ;;  %v4211_v54 = vld [vmem:[%s6109_s3 + $0x88] sm:$0xff] }
 0xdc8   :  { %v2750_v60 = vmul.f32 1.442695, %v2735_v21  ;;  %v2092_v61 = vpop.permute.xlu0 %2091  ;;  %v2755_v62 = vsel %vm873_vm3, %v4959_v58, 0.0  ;;  %v4757_v21 = vpack.c.bf16 %v4211_v54, %v4210_v53 }
 0xdc9   :  { %4968 = vpow2.f32 %v2748_v59  ;;  %4608 = vmatpush3.msra.mxu0 %v2092_v61  ;;  %2756 = vadd.xlane.f32.xlu1 %v2755_v62  ;;  %v2095_v23 = vpop.permute.xlu1 %2094  ;;  %v4215_v61 = vld [vmem:[%s6109_s3 + $0xa8] sm:$0xff] }
 0xdca   :  { %4970 = vpow2.f32 %v2750_v60  ;;  %4617 = vmatprep.subr.mxu0 %v4992_v10  ;;  %v4214_v60 = vld [vmem:[%s6109_s3 + $0xa0] sm:$0xff] }
 0xdcb   :  { %v4961_v63 = vpop.eup %4960  ;;  %v4763_v62 = vpack.c.bf16 %v4215_v61, %v4214_v60 }
 0xdcc   :  { %v4963_v2 = vpop.eup %4962  ;;  %v2758_v3 = vsel %vm873_vm3, %v4961_v63, 0.0  ;;  %v2101_v15 = vpop.permute.xlu0 %2100 }
 0xdcd   :  { %2759 = vadd.xlane.f32.xlu0 %v2758_v3  ;;  %v2761_v5 = vsel %vm873_vm3, %v4963_v2, 0.0  ;;  %v2098_v24 = vpop.permute.xlu1 %2097 }
 0xdce   :  { %2762 = vadd.xlane.f32.xlu1 %v2761_v5  ;;  %v4218_v5 = vld [vmem:[%s6109_s3 + $0xc0] sm:$0xff] }
 0xdcf   :  { %v4965_v6 = vpop.eup %4964 }
 0xdd0   :  { %v4967_v7 = vpop.eup %4966  ;;  %v2764_v0 = vsel %vm873_vm3, %v4965_v6, 0.0 }
 0xdd1   :  { %2765 = vadd.xlane.f32.xlu0 %v2764_v0  ;;  %v2767_v8 = vsel %vm873_vm3, %v4967_v7, 0.0  ;;  %v2104_v25 = vpop.permute.xlu1 %2103 }
 0xdd2   :  { %2768 = vadd.xlane.f32.xlu1 %v2767_v8 }
 0xdd3   :  { %v5536_v9 = vpop.eup %4968 }
 0xdd4   :  { %v5538_v11 = vpop.eup %4970  ;;  %v2770_v12 = vsel %vm873_vm3, %v5536_v9, 0.0 }
 0xdd5   :  { %2771 = vadd.xlane.f32.xlu0 %v2770_v12  ;;  %v2773_v13 = vsel %vm873_vm3, %v5538_v11, 0.0 }
 0xdd6   :  { %2774 = vadd.xlane.f32.xlu1 %v2773_v13  ;;  %v4222_v13 = vld [vmem:[%s6109_s3 + $0xe0] sm:$0xff] }
 0xde7   :  { %2109 = vrot.lane.b32.xlu1 %v5489_v47, %s4997_s24 }
 0xdeb   :  { %2106 = vrot.lane.b32.xlu0 %v5489_v47, %s5001_s28 }
 0xdfd   :  { %v2754_v16 = vpop.xlane.xlu0 %2753 }
 0xdfe   :  { %4972 = vrcp.f32 %v2754_v16 }
 0xe08   :  { %v4973_v17 = vpop.eup %4972 }
 0xe09   :  { %v2784_v18 = vmul.f32 %v4973_v17, %v4957_v33  ;;  %v4224_v17 = vld [vmem:[%s6109_s3 + $0xf0] sm:$0xff] }
 0xe0b   :  { %4605 = vmatmul.mubr.msk.f32.vlgmr.msra.gmra.mrb[34].mxu1 %vm873_vm3, %v2784_v18  ;;  %v4225_v18 = vld [vmem:[%s6109_s3 + $0xf8] sm:$0xff] }
 0xe0c   :  { %4613 = vmatpush3.msra.mxu1 %v2095_v23  ;;  %4614 = vmatprep.mubr.msk.f32.mxu1 %vm4994_vm1, %v4992_v10  ;;  %v4778_v23 = vpack.c.bf16 %v4225_v18, %v4224_v17 }
 0xe0d   :  { %4622 = vmatprep.subr.mxu1 %v4992_v10 }
 0xe56   :  { %v2757_v26 = vpop.xlane.xlu1 %2756 }
 0xe57   :  { %4974 = vrcp.f32 %v2757_v26 }
 0xe5a   :  { %v2760_v29 = vpop.xlane.xlu0 %2759 }
 0xe5b   :  { %4976 = vrcp.f32 %v2760_v29  ;;  %v2763_v47 = vpop.xlane.xlu1 %2762 }
 0xe5c   :  { %4978 = vrcp.f32 %v2763_v47 }
 0xe5e   :  { %v2766_v1 = vpop.xlane.xlu0 %2765 }
 0xe5f   :  { %4980 = vrcp.f32 %v2766_v1  ;;  %v2769_v30 = vpop.xlane.xlu1 %2768 }
 0xe60   :  { %4982 = vrcp.f32 %v2769_v30 }
 0xe61   :  { %v4975_v31 = vpop.eup %4974 }
 0xe62   :  { %v2785_v33 = vmul.f32 %v4975_v31, %v4959_v58  ;;  %v2772_v34 = vpop.xlane.xlu0 %2771  ;;  %v4213_v58 = vld [vmem:[%s6109_s3 + $0x98] sm:$0xff] }
 0xe63   :  { %4984 = vrcp.f32 %v2772_v34  ;;  %v2775_v35 = vpop.xlane.xlu1 %2774  ;;  %v4760_v59 = vpack.c.bf16 %v4213_v58, %v4212_v55 }
 0xe64   :  { %4986 = vrcp.f32 %v2775_v35  ;;  %4610 = vmatmul.mubr.msk.f32.vlgmr.msra.gmra.mrb[28].mxu0 %vm873_vm3, %v2785_v33 }
 0xe65   :  { %v4977_v36 = vpop.eup %4976  ;;  %4618 = vmatpush3.msra.mxu0 %v2098_v24  ;;  %4619 = vmatprep.mubr.msk.f32.mxu0 %vm4994_vm1, %v4992_v10 }
 0xe66   :  { %v4979_v57 = vpop.eup %4978  ;;  %v2786_v37 = vmul.f32 %v4977_v36, %v4961_v63  ;;  %4627 = vmatprep.subr.mxu0 %v4992_v10  ;;  %v2107_v45 = vpop.permute.xlu0 %2106  ;;  %v4216_v63 = vld [vmem:[%s6109_s3 + $0xb0] sm:$0xff] }
 0xe67   :  { %v2787_v39 = vmul.f32 %v4979_v57, %v4963_v2  ;;  %v2110_v48 = vpop.permute.xlu1 %2109  ;;  %v4217_v2 = vld [vmem:[%s6109_s3 + $0xb8] sm:$0xff] }
 0xe68   :  { %4615 = vmatmul.mubr.msk.f32.vlgmr.msra.gmra.mrb[36].mxu1 %vm873_vm3, %v2786_v37  ;;  %v4766_v3 = vpack.c.bf16 %v4217_v2, %v4216_v63 }
 0xe69   :  { %v4981_v40 = vpop.eup %4980  ;;  %4620 = vmatmul.mubr.msk.f32.vlgmr.msra.gmra.mrb[30].mxu0 %vm873_vm3, %v2787_v39  ;;  %4623 = vmatpush3.msra.mxu1 %v2101_v15  ;;  %v4223_v15 = vld [vmem:[%s6109_s3 + $0xe8] sm:$0xff] }
 0xe6a   :  { %v4983_v41 = vpop.eup %4982  ;;  %v2788_v42 = vmul.f32 %v4981_v40, %v4965_v6  ;;  %4628 = vmatpush3.msra.mxu0 %v2104_v25  ;;  %4624 = vmatprep.mubr.msk.f32.mxu1 %vm4994_vm1, %v4992_v10  ;;  %v4219_v6 = vld [vmem:[%s6109_s3 + $0xc8] sm:$0xff]  ;;  %v4775_v16 = vpack.c.bf16 %v4223_v15, %v4222_v13 }
 0xe6b   :  { %v2789_v43 = vmul.f32 %v4983_v41, %v4967_v7  ;;  %4629 = vmatprep.mubr.msk.f32.mxu0 %vm4994_vm1, %v4992_v10  ;;  %4632 = vmatprep.subr.mxu1 %v4992_v10  ;;  %v4769_v7 = vpack.c.bf16 %v4219_v6, %v4218_v5  ;;  %v3819_v6 = vld [vmem:[%s6112_s1] sm:$0x3] }
 0xe6c   :  { %4637 = vmatprep.subr.mxu0 %v4992_v10  ;;  %4625 = vmatmul.mubr.msk.f32.vlgmr.msra.gmra.mrb[38].mxu1 %vm873_vm3, %v2788_v42 }
 0xe6d   :  { %v4985_v46 = vpop.eup %4984  ;;  %4630 = vmatmul.mubr.msk.f32.vlgmr.msra.gmra.mrb[32].mxu0 %vm873_vm3, %v2789_v43  ;;  %4633 = vmatpush3.msra.mxu1 %v2107_v45 }
 0xe6e   :  { %v4987_v50 = vpop.eup %4986  ;;  %v2790_v51 = vmul.f32 %v4985_v46, %v5536_v9  ;;  %4638 = vmatpush3.msra.mxu0 %v2110_v48  ;;  %4634 = vmatprep.mubr.msk.f32.mxu1 %vm4994_vm1, %v4992_v10  ;;  %v4220_v9 = vld [vmem:[%s6109_s3 + $0xd0] sm:$0xff] }
 0xe6f   :  { %v2791_v52 = vmul.f32 %v4987_v50, %v5538_v11  ;;  %4639 = vmatprep.mubr.msk.f32.mxu0 %vm4994_vm1, %v4992_v10  ;;  %4756 = vmatprep.subr.bf16.mxu1 %v4993_v14  ;;  %v4221_v11 = vld [vmem:[%s6109_s3 + $0xd8] sm:$0xff] }
 0xe70   :  { %4635 = vmatmul.mubr.msk.f32.vlgmr.msra.gmra.mrb[40].mxu1 %vm873_vm3, %v2790_v51  ;;  %4780 = vmatprep.subr.bf16.mxu0 %v4993_v14  ;;  %v4772_v12 = vpack.c.bf16 %v4221_v11, %v4220_v9 }
 0xe71   :  { %4640 = vmatmul.mubr.msk.f32.vlgmr.msra.gmra.mrb[34].mxu0 %vm873_vm3, %v2791_v52  ;;  %4674 = vmatprep.mubr.msk.f32.mxu1 %vm4994_vm1, %v4992_v10 }
 0xe72   :  { %4681 = vmatprep.mubr.msk.f32.mxu0 %vm4994_vm1, %v4992_v10  ;;  %4758 = vmatpush3.bf16.msra.mxu1 %v4757_v21  ;;  %v3502_v21 = vrot.slane %v5416_v4, %v1676_v56 }
 0xe73   :  { %4759 = vmatprep.subr.bf16.mxu1 %v4993_v14 }
 0xe76   :  { %4761 = vmatpush3.bf16.msra.mxu1 %v4760_v59 }
 0xe77   :  { %4762 = vmatprep.subr.bf16.mxu1 %v4993_v14 }
 0xe7a   :  { %4764 = vmatpush3.bf16.msra.mxu1 %v4763_v62 }
 0xe7b   :  { %4765 = vmatprep.subr.bf16.mxu1 %v4993_v14 }
 0xe7e   :  { %4767 = vmatpush3.bf16.msra.mxu1 %v4766_v3 }
 0xe7f   :  { %4768 = vmatprep.subr.bf16.mxu1 %v4993_v14 }
 0xe82   :  { %4770 = vmatpush3.bf16.msra.mxu1 %v4769_v7  ;;  %v4226_v7 = vld [vmem:[%s6110_s4 + $0x10] sm:$0xff] }
 0xe83   :  { %4771 = vmatprep.subr.bf16.mxu1 %v4993_v14 }
 0xe86   :  { %4773 = vmatpush3.bf16.msra.mxu1 %v4772_v12 }
 0xe87   :  { %4774 = vmatprep.subr.bf16.mxu1 %v4993_v14 }
 0xe8a   :  { %4776 = vmatpush3.bf16.msra.mxu1 %v4775_v16 }
 0xe8b   :  { %4777 = vmatprep.subr.bf16.mxu1 %v4993_v14 }
 0xe8e   :  { %4779 = vmatpush3.bf16.msra.mxu1 %v4778_v23  ;;  %v3520_v23 = vrot.slane %v5416_v4, %v1694_v27  ;;  %v4231_v27 = vld [vmem:[%s6111_s5 + $0x50] sm:$0xff] }
 0xede   :  { %v2861_v0 = vpop.f32.mrb[34].mxu1 }
 0xedf   :  { %v4606_v8 = vpop.f32.mrb[35].mxu1 }
 0xf37   :  { %v2934_v24 = vpop.f32.mrb[28].mxu0 }
 0xf38   :  { %3377 = vrot.lane.b32.xlu0 %v2934_v24, %s4997_s24  ;;  %v4611_v25 = vpop.f32.mrb[29].mxu0 }
 0xf3b   :  { %v3007_v26 = vpop.f32.mrb[36].mxu1 }
 0xf3c   :  { %v3080_v29 = vpop.f32.mrb[30].mxu0  ;;  %3381 = vrot.lane.b32.xlu1 %v3007_v26, %s5001_s28  ;;  %v4616_v47 = vpop.f32.mrb[37].mxu1  ;;  %v3525_v26 = vrot.slane %v5416_v4, %v1699_v28 }
 0xf3d   :  { %3385 = vrot.lane.b32.xlu0 %v3080_v29, %s4999_s26  ;;  %v4621_v1 = vpop.f32.mrb[31].mxu0  ;;  %v4229_v29 = vld [vmem:[%s6111_s5 + $0x40] sm:$0xff]  ;;  %v4230_v47 = vld [vmem:[%s6111_s5 + $0x48] sm:$0xff] }
 0xf3f   :  { %v3153_v30 = vpop.f32.mrb[38].mxu1 }
 0xf40   :  { %v3226_v31 = vpop.f32.mrb[32].mxu0  ;;  %3389 = vrot.lane.b32.xlu1 %v3153_v30, %s5000_s27  ;;  %v4626_v33 = vpop.f32.mrb[39].mxu1  ;;  %v4784_v30 = vpack.c.bf16 %v4230_v47, %v4229_v29  ;;  %v3726_v29 = vld [vmem:[%s6113_s7 + $0x108] sm:$0xff] }
 0xf41   :  { %3393 = vrot.lane.b32.xlu0 %v3226_v31, %s4998_s25  ;;  %v4631_v34 = vpop.f32.mrb[33].mxu0  ;;  %v4232_v33 = vld [vmem:[%s6111_s5 + $0x58] sm:$0xff]  ;;  %v3730_v47 = vld [vmem:[%s6113_s7 + $0x128] sm:$0xff] }
 0xf42   :  { %v4787_v28 = vpack.c.bf16 %v4232_v33, %v4231_v27  ;;  %v4233_v34 = vld [vmem:[%s6111_s5 + $0x60] sm:$0xff]  ;;  %v3736_v27 = vld [vmem:[%s6113_s7 + $0x158] sm:$0xff] }
 0xf43   :  { %v3299_v35 = vpop.f32.mrb[40].mxu1 }
 0xf44   :  { %v3372_v36 = vpop.f32.mrb[34].mxu0  ;;  %3397 = vrot.lane.b32.xlu1 %v3299_v35, %s4995_s22  ;;  %v4636_v57 = vpop.f32.mrb[41].mxu1  ;;  %v4234_v35 = vld [vmem:[%s6111_s5 + $0x68] sm:$0xff] }
 0xf45   :  { %3401 = vrot.lane.b32.xlu0 %v3372_v36, %s4996_s23  ;;  %v4641_v37 = vpop.f32.mrb[35].mxu0  ;;  %v4790_v36 = vpack.c.bf16 %v4234_v35, %v4233_v34  ;;  %v4235_v57 = vld [vmem:[%s6111_s5 + $0x70] sm:$0xff] }
 0xf46   :  { %v4236_v37 = vld [vmem:[%s6111_s5 + $0x78] sm:$0xff] }
 0xfaa   :  { %v3378_v39 = vpop.permute.xlu0 %3377 }
 0xfab   :  { %v3404_v40 = vsel %vm41_vm0, %v2861_v0, %v3378_v39  ;;  %v4227_v0 = vld [vmem:[%s6110_s4 + $0x18] sm:$0xff]  ;;  %v4793_v39 = vpack.c.bf16 %v4236_v37, %v4235_v57 }
 0xfac   :  { %v4781_v8 = vpack.c.bf16 %v4227_v0, %v4226_v7  ;;  %v3717_v0 = vld [vmem:[%s6113_s7 + $0xa8] sm:$0xff] }
 0xfae   :  { %v3382_v41 = vpop.permute.xlu1 %3381  ;;  %4782 = vmatpush3.bf16.msra.mxu0 %v4781_v8  ;;  %v3719_v8 = vld [vmem:[%s6113_s7 + $0xc0] sm:$0xff] }
 0xfaf   :  { %v3405_v42 = vsel %vm1575_vm4, %v3404_v40, %v3382_v41  ;;  %v3386_v43 = vpop.permute.xlu0 %3385  ;;  %4783 = vmatprep.subr.bf16.mxu0 %v4993_v14  ;;  %v3533_v40 = vrot.slane %v5416_v4, %v1706_v38  ;;  %v3705_v38 = vld [vmem:[%s6113_s7 + $0x18] sm:$0xff] }
 0xfb0   :  { %v3406_v45 = vsel %vm1577_vm5, %v3405_v42, %v3386_v43 }
 0xfb2   :  { %v3390_v46 = vpop.permute.xlu1 %3389 }
 0xfb3   :  { %v3407_v48 = vsel %vm1579_vm6, %v3406_v45, %v3390_v46  ;;  %v3394_v50 = vpop.permute.xlu0 %3393  ;;  %v3708_v46 = vld [vmem:[%s6113_s7 + $0x38] sm:$0xff] }
 0xfb4   :  { %v3408_v51 = vsel %vm1581_vm7, %v3407_v48, %v3394_v50  ;;  %v3707_v50 = vld [vmem:[%s6113_s7 + $0x30] sm:$0xff] }
 0xfb6   :  { %v3398_v52 = vpop.permute.xlu1 %3397 }
 0xfb7   :  { %v3409_v53 = vsel %vm1583_vm8, %v3408_v51, %v3398_v52  ;;  %v3402_v54 = vpop.permute.xlu0 %3401  ;;  %v3712_v51 = vld [vmem:[%s6113_s7 + $0x68] sm:$0xff]  ;;  %v4797_v52 = vpack.c.bf16 %v3707_v50, %v3705_v38  ;;  %v3744_v50 = vld [vmem:[%s6113_s7 + $0x198] sm:$0xff] }
 0xfb8   :  { %v3410_v55 = vsel %vm1585_vm9, %v3409_v53, %v3402_v54  ;;  %v3709_v54 = vld [vmem:[%s6113_s7 + $0x48] sm:$0xff] }
 0xfb9   :  { %4675 = vmatmul.mubr.f32.vlgmr.msra.gmra.mrb[42].mxu1 %v3410_v55  ;;  %v3711_v55 = vld [vmem:[%s6113_s7 + $0x60] sm:$0xff] }
0x108c   :  { %v3494_v58 = vpop.f32.mrb[42].mxu1 }
0x108d   :  { %v3498_v59 = vadd.f32 %v3494_v58, %v5394_v49  ;;  %v4676_v60 = vpop.f32.mrb[43].mxu1  ;;  %v3821_v49 = vsel %vm3820_vm10, %v3819_v6, 0.0  ;;  %v3716_v58 = vld [vmem:[%s6113_s7 + $0x98] sm:$0xff] }
0x108f   :  { %v5653_v61 = vadd.f32 %v3502_v21, %v3498_v59  ;;  %v3714_v21 = vld [vmem:[%s6113_s7 + $0x80] sm:$0xff]  ;;  %v4801_v59 = vpack.c.bf16 %v3711_v55, %v3709_v54  ;;  %v3776_v54 = vld [vmem:[%s6113_s7 + $0x298] sm:$0xff] }
0x1090   :  { %v4803_v60 = vpack.c.bf16 %v3716_v58, %v3714_v21  ;;  %v3747_v21 = vld [vmem:[%s6113_s7 + $0x1b0] sm:$0xff]  ;;  %v3750_v58 = vld [vmem:[%s6113_s7 + $0x1c8] sm:$0xff] }
0x1091   :  { %v3504_v62 = vsel %vm41_vm0, %v5653_v61, 0.0 }
0x1092   :  { %3505 = vadd.xlane.f32.xlu1 %v3504_v62  ;;  %v3713_v62 = vld [vmem:[%s6113_s7 + $0x78] sm:$0xff] }
0x111f   :  { %v3506_v63 = vpop.xlane.xlu1 %3505 }
0x1120   :  { %v3507_v2 = vmul.f32 0.0625, %v3506_v63  ;;  %v3715_v63 = vld [vmem:[%s6113_s7 + $0x90] sm:$0xff] }
0x1122   :  { %v3508_v3 = vsub.f32 %v5653_v61, %v3507_v2  ;;  %v4805_v2 = vpack.c.bf16 %v3715_v63, %v3713_v62  ;;  %v3757_v62 = vld [vmem:[%s6113_s7 + $0x200] sm:$0xff]  ;;  %v4829_v63 = vpack.c.bf16 %v3750_v58, %v3747_v21 }
0x1124   :  { %v3509_v5 = vmul.f32 %v3508_v3, %v3508_v3 }
0x1126   :  { %v3510_v56 = vsel %vm41_vm0, %v3509_v5, 0.0 }
0x1127   :  { %3511 = vadd.xlane.f32.xlu0 %v3510_v56  ;;  %v3718_v56 = vld [vmem:[%s6113_s7 + $0xb0] sm:$0xff] }
0x112b   :  { %3822 = vadd.xlane.f32.xlu0 %v3821_v49  ;;  %v3720_v49 = vld [vmem:[%s6113_s7 + $0xc8] sm:$0xff] }
0x112c   :  { %v4807_v7 = vpack.c.bf16 %v3720_v49, %v3718_v56  ;;  %v3763_v56 = vld [vmem:[%s6113_s7 + $0x230] sm:$0xff] }
0x11b4   :  { %v3512_v9 = vpop.xlane.xlu0 %3511 }
0x11b5   :  { %v3513_v11 = vmul.f32 0.0625, %v3512_v9  ;;  %v4809_v9 = vpack.c.bf16 %v3719_v8, %v3717_v0  ;;  %v3759_v0 = vld [vmem:[%s6113_s7 + $0x210] sm:$0xff]  ;;  %v3762_v8 = vld [vmem:[%s6113_s7 + $0x228] sm:$0xff] }
0x11b7   :  { %v3514_v12 = vadd.f32 1e-05, %v3513_v11 }
0x11b8   :  { %v3823_v13 = vpop.xlane.xlu0 %3822 }
0x11b9   :  { %4988 = vrsqrt.f32 %v3514_v12  ;;  %v3825_v15 = vmul.f32 0.33333334, %v3823_v13  ;;  %v3694_v12 = vrot.slane %v5416_v4, %v1866_v44  ;;  %v3722_v13 = vld [vmem:[%s6113_s7 + $0xe0] sm:$0x7]  ;;  %v3727_v44 = vld [vmem:[%s6113_s7 + $0x110] sm:$0xff] }
0x11ba   :  { %v3723_v4 = vld [vmem:[%s6113_s7 + $0xf0] sm:$0xff] }
0x11bb   :  { %v5670_v16 = vsub.f32 %v3819_v6, %v3825_v15  ;;  %v3721_v15 = vld [vmem:[%s6113_s7 + $0xd8] sm:$0x7] }
0x11bd   :  { %v3827_v17 = vmul.f32 %v5670_v16, %v5670_v16 }
0x11bf   :  { %v3828_v18 = vsel %vm3820_vm10, %v3827_v17, 0.0 }
0x11c0   :  { %3829 = vadd.xlane.f32.xlu1 %v3828_v18  ;;  %v3696_v18 = vld [vmem:[%s6113_s7] ss:$0 sm:$0xff] }
0x11c3   :  { %v4989_v24 = vpop.eup %4988 }
0x11c4   :  { %v3516_v25 = vmul.f32 %v4989_v24, %v3508_v3 }
0x11c6   :  { %v3521_v1 = vmul.f32 %v3520_v23, %v3516_v25 }
0x11c8   :  { %v3526_v31 = vadd.f32 %v3525_v26, %v3521_v1  ;;  %v4811_v26 = vpack.c.bf16 %v3727_v44, %v3724_v19  ;;  %v3733_v1 = vld [vmem:[%s6113_s7 + $0x140] sm:$0xff]  ;;  %v3775_v19 = vld [vmem:[%s6113_s7 + $0x290] sm:$0xff] }
0x11ca   :  { %4682 = vmatmul.mubr.msk.f32.vlgmr.msra.gmra.mrb[36].mxu0 %vm41_vm0, %v3526_v31  ;;  %v4815_v31 = vpack.c.bf16 %v3733_v1, %v3730_v47  ;;  %4812 = vmatprep.subr.bf16.mxu1 %v4811_v26  ;;  %v3781_v26 = vld [vmem:[%s6113_s7 + $0x2c0] sm:$0xff] }
0x11cb   :  { %4785 = vmatpush3.bf16.msra.mxu0 %v4784_v30  ;;  %4700 = vmatprep.mubr.msk.f32.mxu0 %vm4994_vm1, %v4992_v10  ;;  %v4813_v30 = vpack.c.bf16 %v3726_v29, %v3723_v4  ;;  %v3777_v1 = vld [vmem:[%s6113_s7 + $0x2a0] sm:$0xff] }
0x11cc   :  { %4786 = vmatprep.subr.bf16.mxu0 %v4993_v14 }
0x11cd   :  { %4814 = vmatpush1.bf16.msra.mxu1 %v4813_v30  ;;  %v3780_v30 = vld [vmem:[%s6113_s7 + $0x2b8] sm:$0xff] }
0x11ce   :  { %4816 = vmatprep.subr.bf16.mxu1 %v4815_v31  ;;  %v3784_v31 = vld [vmem:[%s6113_s7 + $0x2d8] sm:$0xff] }
0x11cf   :  { %4788 = vmatpush3.bf16.msra.mxu0 %v4787_v28  ;;  %v3739_v28 = vld [vmem:[%s6113_s7 + $0x170] sm:$0xff] }
0x11d0   :  { %4789 = vmatprep.subr.bf16.mxu0 %v4993_v14  ;;  %v4819_v37 = vpack.c.bf16 %v3739_v28, %v3736_v27  ;;  %v3783_v28 = vld [vmem:[%s6113_s7 + $0x2d0] sm:$0xff] }
0x11d3   :  { %4791 = vmatpush3.bf16.msra.mxu0 %v4790_v36 }
0x11d4   :  { %4792 = vmatprep.subr.bf16.mxu0 %v4993_v14  ;;  %v3706_v14 = vld [vmem:[%s6113_s7 + $0x20] sm:$0xff] }
0x11d5   :  { %v4795_v48 = vpack.c.bf16 %v3708_v46, %v3706_v14 }
0x11d7   :  { %4794 = vmatpush3.bf16.msra.mxu0 %v4793_v39  ;;  %v3735_v39 = vld [vmem:[%s6113_s7 + $0x150] sm:$0xff] }
0x11d8   :  { %4796 = vmatprep.subr.bf16.mxu0 %v4795_v48  ;;  %v3741_v48 = vld [vmem:[%s6113_s7 + $0x180] sm:$0xff] }
0x124d   :  { %v3830_v3 = vpop.xlane.xlu1 %3829 }
0x124e   :  { %v3831_v5 = vmul.f32 0.33333334, %v3830_v3  ;;  %v3753_v3 = vld [vmem:[%s6113_s7 + $0x1e0] sm:$0xff] }
0x1250   :  { %v3832_v6 = vadd.f32 1e-05, %v3831_v5  ;;  %v3756_v5 = vld [vmem:[%s6113_s7 + $0x1f8] sm:$0xff] }
0x1251   :  { %v4833_v49 = vpack.c.bf16 %v3756_v5, %v3753_v3  ;;  %v3782_v3 = vld [vmem:[%s6113_s7 + $0x2c8] sm:$0xff] }
0x1252   :  { %4990 = vrsqrt.f32 %v3832_v6  ;;  %v3760_v6 = vld [vmem:[%s6113_s7 + $0x218] sm:$0xff] }
0x125c   :  { %v4991_v11 = vpop.eup %4990 }
0x125d   :  { %v3834_v25 = vmul.f32 %v4991_v11, %v5670_v16  ;;  %v3732_v16 = vld [vmem:[%s6113_s7 + $0x138] sm:$0xff]  ;;  %v3769_v11 = vld [vmem:[%s6113_s7 + $0x260] sm:$0xff] }
0x125f   :  { %v3835_v57 = vmul.f32 %v3834_v25, %v3696_v18  ;;  %v3772_v18 = vld [vmem:[%s6113_s7 + $0x278] sm:$0xff]  ;;  %v3778_v25 = vld [vmem:[%s6113_s7 + $0x2a8] sm:$0xff] }
0x1260   :  { %v4843_v4 = vpack.c.bf16 %v3775_v19, %v3772_v18  ;;  %v4847_v47 = vpack.c.bf16 %v3781_v26, %v3778_v25  ;;  %v3740_v18 = vld [vmem:[%s6113_s7 + $0x178] sm:$0xff]  ;;  %v3791_v19 = vld [vmem:[%s6113_s7 + $0x310] sm:$0xff]  ;;  %v3746_v25 = vld [vmem:[%s6113_s7 + $0x1a8] sm:$0xff] }
0x1261   :  { %v3797_v26 = vld [vmem:[%s6113_s7 + $0x340] sm:$0xff] }
0x129d   :  { %v3603_v41 = vpop.f32.mrb[36].mxu0 }
0x129e   :  { %v3604_v42 = vadd.f32 %v3603_v41, %v3533_v40  ;;  %v4683_v43 = vpop.f32.mrb[37].mxu0  ;;  %v3738_v40 = vld [vmem:[%s6113_s7 + $0x168] sm:$0xff]  ;;  %v3697_v41 = vld [vmem:[%s6113_s7 + $0x1] ss:$0 sm:$0xff] }
0x129f   :  { %v3745_v43 = vld [vmem:[%s6113_s7 + $0x1a0] sm:$0xff]  ;;  %v3836_v46 = vadd.f32 %v3835_v57, %v3697_v41  ;;  %v3796_v41 = vld [vmem:[%s6113_s7 + $0x338] sm:$0xff] }
0x12a0   :  { %v3607_v45 = vmax.f32 %v3604_v42, 0.0  ;;  %v3742_v42 = vld [vmem:[%s6113_s7 + $0x188] sm:$0xff] }
0x12a1   :  { %v4823_v38 = vpack.c.bf16 %v3745_v43, %v3742_v42  ;;  %v3799_v42 = vld [vmem:[%s6113_s7 + $0x350] sm:$0xff] }
0x12a2   :  { %4701 = vmatmul.mubr.msk.f32.vlgmr.msra.gmra.mrb[38].mxu0 %vm1579_vm6, %v3607_v45  ;;  %v4821_v45 = vpack.c.bf16 %v3738_v40, %v3735_v39  ;;  %v3789_v39 = vld [vmem:[%s6113_s7 + $0x300] sm:$0xff]  ;;  %v3792_v40 = vld [vmem:[%s6113_s7 + $0x318] sm:$0xff] }
0x12a3   :  { %3944 = vmatprep.mubr.f32.mxu0 %v4992_v10  ;;  %v3710_v10 = vld [vmem:[%s6113_s7 + $0x50] sm:$0xff]  ;;  %4798 = vmatpush1.bf16.msra.mxu0 %v4797_v52  ;;  %v4825_v52 = vpack.c.bf16 %v3744_v50, %v3741_v48  ;;  %v4857_v43 = vpack.c.bf16 %v3792_v40, %v3789_v39  ;;  %v3805_v48 = vld [vmem:[%s6113_s7 + $0x380] sm:$0xff] }
0x12a4   :  { %v4799_v53 = vpack.c.bf16 %v3712_v51, %v3710_v10  ;;  %v3748_v10 = vld [vmem:[%s6113_s7 + $0x1b8] sm:$0xff]  ;;  %v3751_v51 = vld [vmem:[%s6113_s7 + $0x1d0] sm:$0xff] }
0x12a5   :  { %v4827_v55 = vpack.c.bf16 %v3751_v51, %v3748_v10  ;;  %v3801_v51 = vld [vmem:[%s6113_s7 + $0x360] sm:$0xff]  ;;  %v3807_v40 = vld [vmem:[%s6113_s7 + $0x390] sm:$0xff] }
0x12a6   :  { %4800 = vmatprep.subr.bf16.mxu0 %v4799_v53  ;;  %v3773_v53 = vld [vmem:[%s6113_s7 + $0x280] sm:$0xff] }
0x12a7   :  { %4802 = vmatpush1.bf16.msra.mxu0 %v4801_v59  ;;  %v4875_v59 = vpack.c.bf16 %v3776_v54, %v3773_v53  ;;  %v3808_v53 = vld [vmem:[%s6113_s7 + $0x398] sm:$0xff]  ;;  %v3811_v54 = vld [vmem:[%s6113_s7 + $0x3b0] sm:$0xff] }
0x12a8   :  { %4804 = vmatprep.subr.bf16.mxu0 %v4803_v60  ;;  %v3754_v60 = vld [vmem:[%s6113_s7 + $0x1e8] sm:$0xff]  ;;  %v4867_v21 = vpack.c.bf16 %v3811_v54, %v3808_v53 }
0x12ab   :  { %4806 = vmatpush1.bf16.msra.mxu0 %v4805_v2  ;;  %v4831_v2 = vpack.c.bf16 %v3757_v62, %v3754_v60  ;;  %v3725_v62 = vld [vmem:[%s6113_s7 + $0x100] sm:$0xff] }
0x12ac   :  { %4808 = vmatprep.subr.bf16.mxu0 %v4807_v7  ;;  %v4835_v7 = vpack.c.bf16 %v3763_v56, %v3760_v6 }
0x12af   :  { %4810 = vmatpush1.bf16.msra.mxu0 %v4809_v9  ;;  %v3766_v9 = vld [vmem:[%s6113_s7 + $0x248] sm:$0xff] }
0x12b0   :  { %4241 = vmatprep.subr.msk.mxu0 %vm3873_vm11, %v3722_v13  ;;  %v4839_v13 = vpack.c.bf16 %v3769_v11, %v3766_v9  ;;  %v3785_v11 = vld [vmem:[%s6113_s7 + $0x2e0] sm:$0xff] }
0x12b3   :  { %4242 = vmatpush1.msk.msra.mxu0 %vm3873_vm11, %v3721_v15  ;;  %v3765_v15 = vld [vmem:[%s6113_s7 + $0x240] sm:$0xff] }
0x12b4   :  { %4876 = vmatprep.subr.bf16.mxu0 %v4875_v59 }
0x1375   :  { %v3686_v17 = vpop.f32.mrb[38].mxu0 }
0x1376   :  { %v3690_v23 = vadd.f32 %v3686_v17, %v5653_v61  ;;  %v4702_v24 = vpop.f32.mrb[39].mxu0  ;;  %v3729_v61 = vld [vmem:[%s6113_s7 + $0x120] sm:$0xff]  ;;  %v3768_v17 = vld [vmem:[%s6113_s7 + $0x258] sm:$0xff] }
0x1377   :  { %v4817_v34 = vpack.c.bf16 %v3732_v16, %v3729_v61  ;;  %v4841_v44 = vpack.c.bf16 %v3768_v17, %v3765_v15  ;;  %v3774_v24 = vld [vmem:[%s6113_s7 + $0x288] sm:$0xff]  ;;  %v3787_v61 = vld [vmem:[%s6113_s7 + $0x2f0] sm:$0xff]  ;;  %v4849_v16 = vpack.c.bf16 %v3780_v30, %v3777_v1  ;;  %v3737_v17 = vld [vmem:[%s6113_s7 + $0x160] sm:$0xff] }
0x1378   :  { %v5805_v33 = vadd.f32 %v3694_v12, %v3690_v23  ;;  %v4837_v12 = vpack.c.bf16 %v3762_v8, %v3759_v0  ;;  %v3771_v23 = vld [vmem:[%s6113_s7 + $0x270] sm:$0xff]  ;;  %v4851_v27 = vpack.c.bf16 %v3787_v61, %v3784_v31  ;;  %v3734_v8 = vld [vmem:[%s6113_s7 + $0x148] sm:$0xff]  ;;  %v3749_v30 = vld [vmem:[%s6113_s7 + $0x1c0] sm:$0xff] }
0x1379   :  { %4818 = vmatpush1.bf16.msra.mxu1 %v4817_v34  ;;  %v4845_v29 = vpack.c.bf16 %v3774_v24, %v3771_v23  ;;  %v3786_v34 = vld [vmem:[%s6113_s7 + $0x2e8] sm:$0xff]  ;;  %v3731_v0 = vld [vmem:[%s6113_s7 + $0x130] sm:$0xff]  ;;  %v3752_v31 = vld [vmem:[%s6113_s7 + $0x1d8] sm:$0xff] }
0x137a   :  { %v3842_v35 = vrot.slane %v5805_v33, 4  ;;  %v3838_v36 = vrot.slane %v5805_v33, 2  ;;  %v3846_v14 = vrot.slane %v5805_v33, 6  ;;  %4820 = vmatprep.subr.bf16.mxu1 %v4819_v37  ;;  %v4853_v57 = vpack.c.bf16 %v3786_v34, %v3783_v28  ;;  %v3743_v24 = vld [vmem:[%s6113_s7 + $0x190] sm:$0xff] }
0x137b   :  { %v3803_v61 = vld [vmem:[%s6113_s7 + $0x370] sm:$0xff] }
0x137c   :  { %3843 = vrot.lane.b32.xlu1 %v3842_v35, %s5001_s28  ;;  %3839 = vrot.lane.b32.xlu0 %v3838_v36, %s4997_s24  ;;  %v3790_v35 = vld [vmem:[%s6113_s7 + $0x308] sm:$0xff]  ;;  %v3793_v36 = vld [vmem:[%s6113_s7 + $0x320] sm:$0xff] }
0x137d   :  { %4822 = vmatpush1.bf16.msra.mxu1 %v4821_v45  ;;  %v4855_v37 = vpack.c.bf16 %v3793_v36, %v3790_v35  ;;  %v4859_v45 = vpack.c.bf16 %v3799_v42, %v3796_v41  ;;  %v3755_v34 = vld [vmem:[%s6113_s7 + $0x1f0] sm:$0xff]  ;;  %v3758_v35 = vld [vmem:[%s6113_s7 + $0x208] sm:$0xff]  ;;  %v3809_v36 = vld [vmem:[%s6113_s7 + $0x3a0] sm:$0xff] }
0x137e   :  { %4824 = vmatprep.subr.bf16.mxu1 %v4823_v38  ;;  %v3802_v38 = vld [vmem:[%s6113_s7 + $0x368] sm:$0xff]  ;;  %v3761_v42 = vld [vmem:[%s6113_s7 + $0x220] sm:$0xff] }
0x137f   :  { %v4863_v10 = vpack.c.bf16 %v3805_v48, %v3802_v38  ;;  %v3810_v41 = vld [vmem:[%s6113_s7 + $0x3a8] sm:$0xff]  ;;  %v3817_v38 = vld [vmem:[%s6113_s7 + $0x3e0] sm:$0xff]  ;;  %v3815_v48 = vld [vmem:[%s6113_s7 + $0x3d0] sm:$0xff] }
0x1380   :  { %3847 = vrot.lane.b32.xlu1 %v3846_v14, %s4999_s26  ;;  %3851 = vrot.lane.b32.xlu0 %v3836_v46, %s5000_s27  ;;  %v3795_v14 = vld [vmem:[%s6113_s7 + $0x330] sm:$0xff]  ;;  %v3798_v46 = vld [vmem:[%s6113_s7 + $0x348] sm:$0xff] }
0x1381   :  { %4826 = vmatpush1.bf16.msra.mxu1 %v4825_v52  ;;  %v4861_v50 = vpack.c.bf16 %v3798_v46, %v3795_v14  ;;  %v3804_v52 = vld [vmem:[%s6113_s7 + $0x378] sm:$0xff]  ;;  %v3814_v46 = vld [vmem:[%s6113_s7 + $0x3c8] sm:$0xff] }
0x1382   :  { %4828 = vmatprep.subr.bf16.mxu1 %v4827_v55  ;;  %v4865_v55 = vpack.c.bf16 %v3804_v52, %v3801_v51  ;;  %v3813_v51 = vld [vmem:[%s6113_s7 + $0x3c0] sm:$0xff]  ;;  %v3816_v52 = vld [vmem:[%s6113_s7 + $0x3d8] sm:$0xff] }
0x1383   :  { %v4873_v54 = vpack.c.bf16 %v3816_v52, %v3813_v51 }
0x1385   :  { %4830 = vmatpush1.bf16.msra.mxu1 %v4829_v63  ;;  %v3728_v63 = vld [vmem:[%s6113_s7 + $0x118] sm:$0xff] }
0x1386   :  { %4832 = vmatprep.subr.bf16.mxu1 %v4831_v2  ;;  %v3779_v2 = vld [vmem:[%s6113_s7 + $0x2b0] sm:$0xff]  ;;  %v4877_v56 = vpack.c.bf16 %v3728_v63, %v3725_v62 }
0x1389   :  { %4834 = vmatpush1.bf16.msra.mxu1 %v4833_v49 }
0x138a   :  { %4836 = vmatprep.subr.bf16.mxu1 %v4835_v7  ;;  %v4879_v7 = vpack.c.bf16 %v3782_v3, %v3779_v2 }
0x138d   :  { %4838 = vmatpush1.bf16.msra.mxu1 %v4837_v12  ;;  %v3788_v12 = vld [vmem:[%s6113_s7 + $0x2f8] sm:$0xff] }
0x138e   :  { %4840 = vmatprep.subr.bf16.mxu1 %v4839_v13  ;;  %v4881_v13 = vpack.c.bf16 %v3734_v8, %v3731_v0  ;;  %v4883_v15 = vpack.c.bf16 %v3788_v12, %v3785_v11 }
0x1391   :  { %4842 = vmatpush1.bf16.msra.mxu1 %v4841_v44  ;;  %v3794_v44 = vld [vmem:[%s6113_s7 + $0x328] sm:$0xff] }
0x1392   :  { %4844 = vmatprep.subr.bf16.mxu1 %v4843_v4  ;;  %v4885_v4 = vpack.c.bf16 %v3740_v18, %v3737_v17  ;;  %v4887_v23 = vpack.c.bf16 %v3794_v44, %v3791_v19 }
0x1395   :  { %4846 = vmatpush1.bf16.msra.mxu1 %v4845_v29  ;;  %v3800_v29 = vld [vmem:[%s6113_s7 + $0x358] sm:$0xff] }
0x1396   :  { %4848 = vmatprep.subr.bf16.mxu1 %v4847_v47  ;;  %v4889_v47 = vpack.c.bf16 %v3746_v25, %v3743_v24  ;;  %v4891_v1 = vpack.c.bf16 %v3800_v29, %v3797_v26 }
0x1399   :  { %4850 = vmatpush1.bf16.msra.mxu1 %v4849_v16  ;;  %v3806_v16 = vld [vmem:[%s6113_s7 + $0x388] sm:$0xff] }
0x139a   :  { %4852 = vmatprep.subr.bf16.mxu1 %v4851_v27  ;;  %v4893_v27 = vpack.c.bf16 %v3752_v31, %v3749_v30  ;;  %v4895_v28 = vpack.c.bf16 %v3806_v16, %v3803_v61 }
0x139d   :  { %4854 = vmatpush1.bf16.msra.mxu1 %v4853_v57  ;;  %v3812_v57 = vld [vmem:[%s6113_s7 + $0x3b8] sm:$0xff] }
0x139e   :  { %4856 = vmatprep.subr.bf16.mxu1 %v4855_v37  ;;  %v4897_v37 = vpack.c.bf16 %v3758_v35, %v3755_v34  ;;  %v4899_v39 = vpack.c.bf16 %v3812_v57, %v3809_v36 }
0x13a1   :  { %4858 = vmatpush1.bf16.msra.mxu1 %v4857_v43  ;;  %v4869_v43 = vpack.c.bf16 %v3810_v41, %v3807_v40 }
0x13a2   :  { %4860 = vmatprep.subr.bf16.mxu1 %v4859_v45  ;;  %v3764_v45 = vld [vmem:[%s6113_s7 + $0x238] sm:$0xff] }
0x13a3   :  { %v4901_v14 = vpack.c.bf16 %v3764_v45, %v3761_v42 }
0x13a5   :  { %4862 = vmatpush1.bf16.msra.mxu1 %v4861_v50  ;;  %v4871_v50 = vpack.c.bf16 %v3817_v38, %v3814_v46 }
0x13a6   :  { %4864 = vmatprep.subr.bf16.mxu1 %v4863_v10  ;;  %v3818_v10 = vld [vmem:[%s6113_s7 + $0x3e8] sm:$0xff] }
0x13a7   :  { %v4903_v53 = vpack.c.bf16 %v3818_v10, %v3815_v48 }
0x13a9   :  { %4866 = vmatpush1.bf16.msra.mxu1 %v4865_v55  ;;  %v3767_v55 = vld [vmem:[%s6113_s7 + $0x250] sm:$0xff] }
0x13aa   :  { %4868 = vmatprep.subr.bf16.mxu1 %v4867_v21  ;;  %v3770_v21 = vld [vmem:[%s6113_s7 + $0x268] sm:$0xff] }
0x13ad   :  { %4870 = vmatpush1.bf16.msra.mxu1 %v4869_v43 }
0x13ae   :  { %4872 = vmatprep.subr.bf16.mxu1 %v4871_v50 }
0x13b1   :  { %4874 = vmatpush1.bf16.msra.mxu1 %v4873_v54 }
0x13ee   :  { %v3844_v58 = vpop.permute.xlu1 %3843  ;;  %v3840_v59 = vpop.permute.xlu0 %3839 }
0x13ef   :  { %v3854_v60 = vsel %vm41_vm0, %v5805_v33, %v3840_v59  ;;  %v4238_v59 = vld [vmem:[%s6113_s7 + $0x2] ss:$8 sm:$0x3] }
0x13f0   :  { %v3855_v6 = vsel %vm1575_vm4, %v3854_v60, %v3844_v58  ;;  %v4905_v58 = vpack.c.bf16 %v3770_v21, %v3767_v55  ;;  %v3862_v60 = vrot.slane %v4238_v59, %v5078_v20  ;;  %v3866_v62 = vrot.slane %v4238_v59, %v5086_v22 }
0x13f2   :  { %v3848_v5 = vpop.permute.xlu1 %3847  ;;  %v3852_v33 = vpop.permute.xlu0 %3851 }
0x13f3   :  { %v3856_v49 = vsel %vm1577_vm5, %v3855_v6, %v3848_v5 }
0x13f4   :  { %v3857_v9 = vsel %vm1579_vm6, %v3856_v49, %v3852_v33 }
0x13f5   :  { %4243 = vmatmul.mubr.msk.f32.vlgmr.msra.gmra.mrb[40].mxu0 %vm3869_vm12, %v3857_v9 }
0x13f6   :  { %4878 = vmatpush3.bf16.msra.mxu0 %v4877_v56  ;;  %v4239_v56 = vld [vmem:[%s6113_s7 + $0x3] ss:$8 sm:$0x7] }
0x13f7   :  { %4880 = vmatprep.subr.bf16.mxu0 %v4879_v7  ;;  %v3957_v49 = vrot.slane %v4239_v56, %v5078_v20  ;;  %v4240_v7 = vld [vmem:[%s6113_s7 + $0x5] ss:$8 sm:$0x7]  ;;  %v3961_v0 = vrot.slane %v4239_v56, %v5086_v22  ;;  %v3965_v11 = vrot.slane %v4239_v56, %v5106_v32 }
0x13f8   :  { %v4121_v19 = vrot.slane %v4240_v7, %v5086_v22  ;;  %v4125_v25 = vrot.slane %v4240_v7, %v5106_v32  ;;  %v3702_v22 = vld [vmem:[%s6113_s7 + $0x4] ss:$0 sm:$0xff] }
0x13fa   :  { %4882 = vmatpush3.bf16.msra.mxu0 %v4881_v13  ;;  %v4117_v13 = vrot.slane %v4240_v7, %v5078_v20 }
0x13fb   :  { %4884 = vmatprep.subr.bf16.mxu0 %v4883_v15 }
0x13fe   :  { %4886 = vmatpush3.bf16.msra.mxu0 %v4885_v4 }
0x13ff   :  { %4888 = vmatprep.subr.bf16.mxu0 %v4887_v23 }
0x1402   :  { %4890 = vmatpush3.bf16.msra.mxu0 %v4889_v47 }
0x1403   :  { %4892 = vmatprep.subr.bf16.mxu0 %v4891_v1 }
0x1406   :  { %4894 = vmatpush3.bf16.msra.mxu0 %v4893_v27 }
0x1407   :  { %4896 = vmatprep.subr.bf16.mxu0 %v4895_v28 }
0x140a   :  { %4898 = vmatpush3.bf16.msra.mxu0 %v4897_v37 }
0x140b   :  { %4900 = vmatprep.subr.bf16.mxu0 %v4899_v39 }
0x140e   :  { %4902 = vmatpush3.bf16.msra.mxu0 %v4901_v14 }
0x140f   :  { %4904 = vmatprep.subr.bf16.mxu0 %v4903_v53 }
0x1412   :  { %4906 = vmatpush3.bf16.msra.mxu0 %v4905_v58 }
0x14c8   :  { %v3946_v63 = vpop.f32.mrb[40].mxu0 }
0x14c9   :  { %v3947_v2 = vadd.f32 %v3946_v63, %v3862_v60  ;;  %v3948_v3 = vpop.f32.mrb[41].mxu0 }
0x14ca   :  { %v3949_v5 = vadd.f32 %v3948_v3, %v3866_v62 }
0x14cb   :  { %v3951_v33 = vmax.f32 %v3947_v2, 0.0 }
0x14cc   :  { %v3952_v6 = vmax.f32 %v3949_v5, 0.0 }
0x14ce   :  { %4033 = vmatprep.mubr.f32.mxu1 %v3952_v6  ;;  %4104 = vmatprep.mubr.f32.mxu0 %v3952_v6 }
0x14cf   :  { %4034 = vmatmul.mubr.f32.vlgmr.msra.gmra.mrb[44].mxu1 %v3951_v33  ;;  %4105 = vmatmul.mubr.f32.vlgmr.msra.gmra.mrb[42].mxu0 %v3951_v33 }
0x15a2   :  { %v4035_v8 = vpop.f32.mrb[44].mxu1  ;;  %v4404_v9 = vpop.f32.mrb[42].mxu0 }
0x15a3   :  { %v4036_v12 = vadd.f32 %v4035_v8, %v3957_v49  ;;  %v4037_v15 = vpop.f32.mrb[45].mxu1  ;;  %v4405_v17 = vpop.f32.mrb[43].mxu0 }
0x15a4   :  { %v4038_v18 = vadd.f32 %v4037_v15, %v3961_v0  ;;  %v4406_v44 = vadd.f32 %v4405_v17, %v4404_v9 }
0x15a5   :  { %v4110_v4 = vmax.f32 %v4036_v12, 0.0 }
0x15a6   :  { %v4111_v23 = vmax.f32 %v4038_v18, 0.0  ;;  %v4107_v24 = vadd.f32 %v4406_v44, %v3965_v11 }
0x15a7   :  { %v4129_v26 = vmul.f32 %v4117_v13, %v4110_v4 }
0x15a8   :  { %v4130_v29 = vmul.f32 %v4121_v19, %v4111_v23  ;;  %v4112_v47 = vmax.f32 %v4107_v24, 0.0 }
0x15a9   :  { %v4133_v1 = vsel %vm4132_vm13, %v4129_v26, 0.0 }
0x15aa   :  { %v4134_v30 = vsel %vm4132_vm13, %v4130_v29, 0.0  ;;  %v4131_v31 = vmul.f32 %v4125_v25, %v4112_v47 }
0x15ab   :  { %v4135_v61 = vadd.f32 %v4134_v30, %v4133_v1 }
0x15ac   :  { %v4136_v20 = vsel %vm4132_vm13, %v4131_v31, 0.0 }
0x15ad   :  { %v4137_v16 = vadd.f32 %v4136_v20, %v4135_v61 }
0x15af   :  { %4138 = vadd.xlane.f32.xlu1 %v4137_v16 }
0x163c   :  { %v4139_v27 = vpop.xlane.xlu1 %4138 }
0x163d   :  { %v4140_v28 = vadd.f32 %v4139_v27, %v3702_v22 }
0x163f   :  { %4142 = vst.msk [vmem:[%s6114_s8] sm:$0x3] %vm4141_vm14, %v4140_v28 }

</bundles_post_ra>
